<compile_context>
chip_gen: v5e
topology: v5e:2x2
jax: 0.10.0
libtpu: 0.0.40
codegen_flags: <defaults>
</compile_context>

<pallas_src>
import jax
import jax.numpy as jnp
from jax.experimental import pallas as pl
from jax.experimental.pallas import tpu as pltpu

# Module hyperparameters (from TCN.__init__):
#   conv     = Conv1d(in_ch,   out_ch*5, kernel=10, stride=1, padding=10)
#   conv_out = Conv1d(out_ch*5, out_ch,  kernel=20, stride=1, padding=4)
K1, P1 = 10, 10
K2, P2 = 20, 4

_LANE = 128
_SUB = 8


def _cdiv(a, b):
    return -(-a // b)


def _round_up(a, b):
    return _cdiv(a, b) * b


def _pick_bt(batch, length):
    """Batch elements fused (time-major) with time into the lane axis per step."""
    # Prefer a 128-multiple bt: every tap offset k*bt and pad offset P*bt is
    # then a whole-vreg lane shift.  Keep G >= 2 so v7x megacore has work on
    # both TensorCores, and cap the fused width so intermediates stay modest.
    for bt in (512, 384, 256, 128):
        if batch >= 2 * bt and length * bt <= 4096:
            return bt
    if batch >= 128 and length * 128 <= 4096:
        return 128
    # Small batches: just make the fused lane axis reasonably wide (batch is
    # padded up to bt); unaligned tap slices are handled by the VMEM load path.
    for target in (2048, 1024, 512, 256, _LANE):
        bt = _cdiv(target, length)
        if batch >= bt:
            return bt
    return _cdiv(_LANE, length)


def _make_kernel(*, c_in_p, c_mid_p, bt, n1, n2, taps1, taps2, compute_dtype):
    """Kernel closure over static sizes.  Fused lane layout: column = t*bt + b."""
    pad2 = P2 * bt

    def staged_conv(src_slice, w_ref, cols_ref, c, K, taps, n):
        # im2col conv: stage `taps` time-shifted copies into cols_ref (aligned
        # 8-multiple row blocks, full lane width), one MXU matmul per chunk.
        acc = None
        for k0 in range(0, K, taps):
            kh = min(k0 + taps, K)
            for k in range(k0, kh):
                r = (k - k0) * c
                cols_ref[r:r + c, 0:n] = src_slice(k, n)
            rows = (kh - k0) * c
            part = jnp.dot(w_ref[:, k0 * c:kh * c], cols_ref[0:rows, 0:n],
                           preferred_element_type=jnp.float32)
            acc = part if acc is None else acc + part
        return acc

    def kernel(x_ref, w1_ref, b1_ref, w2_ref, b2_ref, out_ref, hp_ref, cols_ref):
        # conv1: input time-padded wrapper-side; taps slice x_ref directly.
        acc1 = staged_conv(lambda k, n: x_ref[:, k * bt:k * bt + n],
                           w1_ref, cols_ref, c_in_p, K1, taps1, n1)
        # bias folded into the sigmoid input (implicit lane broadcast); EUP op.
        h = jax.nn.sigmoid(acc1 + b1_ref[...]).astype(compute_dtype)  # (c_mid_p, n1)

        # Stage conv2's zero-padded input in VMEM scratch (tiny masked pad
        # stores; the bulk store is full-width at a static lane offset).
        hp_ref[:, 0:pad2] = jnp.zeros((c_mid_p, pad2), compute_dtype)
        hp_ref[:, pad2:pad2 + n1] = h
        hp_ref[:, pad2 + n1:pad2 + n1 + pad2] = jnp.zeros((c_mid_p, pad2),
                                                          compute_dtype)

        # conv2: chunked (<=120-deep) staged im2col matmuls from VMEM scratch.
        acc2 = staged_conv(lambda k, n: hp_ref[:, k * bt:k * bt + n],
                           w2_ref, cols_ref, c_mid_p, K2, taps2, n2)
        out_ref[...] = (acc2 + b2_ref[...]).astype(out_ref.dtype)

    return kernel


def tcn_forward(x, w1, b1, w2, b2, *, compute_dtype=jnp.bfloat16,
                out_dtype=jnp.float32, max_contract=128):
    """x: (B, C_in, L).  Returns (B, C_out, L) with PyTorch Conv1d semantics."""
    B, c_in, L = x.shape
    c_mid = w1.shape[0]
    c_out = w2.shape[0]

    L1 = L + 2 * P1 - K1 + 1                  # conv1 output length
    L2 = L1 + 2 * P2 - K2 + 1                 # conv2 output length (== L)

    c_in_p = _round_up(c_in, _SUB)
    c_mid_p = _round_up(c_mid, _SUB)
    c_out_p = _round_up(c_out, _SUB)

    bt = _pick_bt(B, L)
    G = _cdiv(B, bt)
    B_pad = G * bt
    Lp1 = L + 2 * P1
    n1, n2 = L1 * bt, L2 * bt

    taps1 = min(max(1, max_contract // c_in_p), K1)
    taps2 = min(max(1, max_contract // c_mid_p), K2)
    cols_rows = max(taps1 * c_in_p, taps2 * c_mid_p)

    # Wrapper-side layout plumbing: pad (batch -> B_pad, channels -> sublane
    # multiples, conv1 time pad), fuse (time, batch) time-major into the lane
    # axis, cast MXU operands to bf16.
    xb = jnp.pad(x, ((0, B_pad - B), (0, c_in_p - c_in), (P1, P1)))
    x_f = (xb.reshape(G, bt, c_in_p, Lp1)
             .transpose(0, 2, 3, 1)                         # (G, c_in_p, Lp1, bt)
             .reshape(G, c_in_p, Lp1 * bt)
             .astype(compute_dtype))

    # im2col weight layout: column index = k * C_pad + c (padded cols are zero).
    w1p = jnp.pad(w1, ((0, c_mid_p - c_mid), (0, c_in_p - c_in), (0, 0)))
    w2p = jnp.pad(w2, ((0, c_out_p - c_out), (0, c_mid_p - c_mid), (0, 0)))
    w1_2d = jnp.transpose(w1p, (0, 2, 1)).reshape(c_mid_p, K1 * c_in_p).astype(compute_dtype)
    w2_2d = jnp.transpose(w2p, (0, 2, 1)).reshape(c_out_p, K2 * c_mid_p).astype(compute_dtype)
    b1c = jnp.pad(b1, (0, c_mid_p - c_mid)).reshape(c_mid_p, 1).astype(jnp.float32)
    b2c = jnp.pad(b2, (0, c_out_p - c_out)).reshape(c_out_p, 1).astype(jnp.float32)

    kernel = _make_kernel(c_in_p=c_in_p, c_mid_p=c_mid_p, bt=bt, n1=n1, n2=n2,
                          taps1=taps1, taps2=taps2, compute_dtype=compute_dtype)

    cw = jnp.dtype(compute_dtype).itemsize
    cost = pl.CostEstimate(
        flops=2 * B_pad * (c_mid_p * c_in_p * K1 * L1 + c_out_p * c_mid_p * K2 * L2),
        transcendentals=B_pad * c_mid_p * L1,
        bytes_accessed=cw * (G * c_in_p * Lp1 * bt + c_mid_p * K1 * c_in_p
                             + c_out_p * K2 * c_mid_p + G * c_out_p * n2)
                       + 4 * (c_mid_p + c_out_p),
    )

    # Per-step VMEM budget: double-buffered I/O blocks + weights + scratch.
    blk_in = c_in_p * Lp1 * bt * cw
    blk_out = c_out_p * n2 * cw
    wgt = (c_mid_p * K1 * c_in_p + c_out_p * K2 * c_mid_p) * cw + 4 * (c_mid_p + c_out_p)
    scr = (c_mid_p * (n1 + 2 * P2 * bt) + cols_rows * n1) * cw
    vmem_est = 2 * (blk_in + blk_out + wgt) + scr
    vmem_limit = int(min(64 * 2**20, max(32 * 2**20, 2 * vmem_est)))

    out_f = pl.pallas_call(
        kernel,
        out_shape=jax.ShapeDtypeStruct((G, c_out_p, n2), compute_dtype),
        grid_spec=pltpu.PrefetchScalarGridSpec(
            num_scalar_prefetch=0,
            grid=(G,),
            in_specs=[
                pl.BlockSpec((None, c_in_p, Lp1 * bt), lambda g: (g, 0, 0)),
                pl.BlockSpec((c_mid_p, K1 * c_in_p), lambda g: (0, 0)),
                pl.BlockSpec((c_mid_p, 1), lambda g: (0, 0)),
                pl.BlockSpec((c_out_p, K2 * c_mid_p), lambda g: (0, 0)),
                pl.BlockSpec((c_out_p, 1), lambda g: (0, 0)),
            ],
            out_specs=pl.BlockSpec((None, c_out_p, n2), lambda g: (g, 0, 0)),
            scratch_shapes=[
                pltpu.VMEM((c_mid_p, n1 + 2 * P2 * bt), compute_dtype),   # padded h
                pltpu.VMEM((cols_rows, n1), compute_dtype),               # staged im2col
            ],
        ),
        compiler_params=pltpu.CompilerParams(
            dimension_semantics=("parallel",),
            vmem_limit_bytes=vmem_limit),
        cost_estimate=cost,
    )(x_f, w1_2d, b1c, w2_2d, b2c)

    # Un-fuse the (time, batch) lane axis back to (B, C_out, L); stay in bf16
    # until the very end.
    out = (out_f.reshape(G, c_out_p, L2, bt)
                .transpose(0, 3, 1, 2)
                .reshape(B_pad, c_out_p, L2)[:B, :c_out]
                .astype(out_dtype))
    return out


if __name__ == "__main__":
    # Small shapes consistent with the module's forward: (B, in_channels, L).
    B, C_IN, C_OUT, L = 2, 4, 4, 16
    C_MID = C_OUT * 5

    key = jax.random.PRNGKey(0)
    k1, k2, kx = jax.random.split(key, 3)
    # init_2: normal(mean=0, std=0.02) weights, zero biases.
    w1 = 0.02 * jax.random.normal(k1, (C_MID, C_IN, K1), jnp.float32)
    b1 = jnp.zeros((C_MID,), jnp.float32)
    w2 = 0.02 * jax.random.normal(k2, (C_OUT, C_MID, K2), jnp.float32)
    b2 = jnp.zeros((C_OUT,), jnp.float32)
    x = jax.random.normal(kx, (B, C_IN, L), jnp.float32)

    out = jax.block_until_ready(tcn_forward(x, w1, b1, w2, b2))
    assert out.shape == (B, C_OUT, L), out.shape

    dn = ("NCH", "OIH", "NCH")
    hp = jax.lax.Precision.HIGHEST

    # Matched-rounding reference: f32 conv on bf16-rounded operands reproduces
    # the kernel's bf16-operand / f32-accumulate MXU math (kernel output is
    # additionally bf16-rounded, hence the ~few-ulp tolerance).
    rnd = lambda a: a.astype(jnp.bfloat16).astype(jnp.float32)
    h_m = jax.nn.sigmoid(
        jax.lax.conv_general_dilated(rnd(x), rnd(w1), (1,), [(P1, P1)],
                                     dimension_numbers=dn, precision=hp)
        + b1[None, :, None])
    out_m = (jax.lax.conv_general_dilated(rnd(h_m), rnd(w2), (1,), [(P2, P2)],
                                          dimension_numbers=dn, precision=hp)
             + b2[None, :, None])
    assert jnp.allclose(out, out_m, atol=3e-3, rtol=3e-2), \
        float(jnp.max(jnp.abs(out - out_m)))

    # Full-f32 semantic reference (PyTorch cross-correlation semantics).
    h_ref = jax.nn.sigmoid(
        jax.lax.conv_general_dilated(x, w1, (1,), [(P1, P1)],
                                     dimension_numbers=dn, precision=hp)
        + b1[None, :, None])
    out_ref = (jax.lax.conv_general_dilated(h_ref, w2, (1,), [(P2, P2)],
                                            dimension_numbers=dn, precision=hp)
               + b2[None, :, None])
    assert jnp.allclose(out, out_ref, atol=2e-2, rtol=2e-2), \
        float(jnp.max(jnp.abs(out - out_ref)))

    print("KERNEL_OK")
</pallas_src>

<mosaic_0001>
module attributes {stable_mosaic.version = 11 : i64} {
  func.func @kernel(%arg0: i32, %arg1: memref<1x8x288xbf16, #tpu.memory_space<vmem>>, %arg2: memref<24x80xbf16, #tpu.memory_space<vmem>>, %arg3: memref<24x1xf32, #tpu.memory_space<vmem>>, %arg4: memref<8x480xbf16, #tpu.memory_space<vmem>>, %arg5: memref<8x1xf32, #tpu.memory_space<vmem>>, %arg6: memref<1x8x128xbf16, #tpu.memory_space<vmem>>, %arg7: memref<24x280xbf16, #tpu.memory_space<vmem>>, %arg8: memref<120x216xbf16, #tpu.memory_space<vmem>>) attributes {dimension_semantics = [#tpu.dimension_semantics<parallel>], iteration_bounds = array<i64: 1>, scalar_prefetch = 0 : i64, scratch_operands = 2 : i64, tpu.core_type = #tpu.core_type<tc>, window_params = [{transform_indices = @transform_0, window_bounds = array<i64: 1, 8, 288>}, {pipeline_mode = #tpu.pipeline_mode<synchronous>, transform_indices = @transform_1, window_bounds = array<i64: 24, 80>}, {pipeline_mode = #tpu.pipeline_mode<synchronous>, transform_indices = @transform_2, window_bounds = array<i64: 24, 1>}, {pipeline_mode = #tpu.pipeline_mode<synchronous>, transform_indices = @transform_3, window_bounds = array<i64: 8, 480>}, {pipeline_mode = #tpu.pipeline_mode<synchronous>, transform_indices = @transform_4, window_bounds = array<i64: 8, 1>}, {transform_indices = @transform_5, window_bounds = array<i64: 1, 8, 128>}]} {
    %c0 = arith.constant 0 : index
    %c0_0 = arith.constant 0 : index
    %c0_1 = arith.constant 0 : index
    %0 = vector.load %arg1[%c0, %c0_0, %c0_1] : memref<1x8x288xbf16, #tpu.memory_space<vmem>>, vector<1x8x216xbf16>
    %1 = vector.shape_cast %0 : vector<1x8x216xbf16> to vector<8x216xbf16>
    %c0_2 = arith.constant 0 : index
    %c0_3 = arith.constant 0 : index
    %2 = vector.load %arg8[%c0_2, %c0_3] : memref<120x216xbf16, #tpu.memory_space<vmem>>, vector<8x216xbf16>
    tpu.vector_store %arg8[%c0_2, %c0_3], %1 {strides = array<i32>} : memref<120x216xbf16, #tpu.memory_space<vmem>>, vector<8x216xbf16>,
    %c0_4 = arith.constant 0 : index
    %c0_5 = arith.constant 0 : index
    %c8 = arith.constant 8 : index
    %3 = vector.load %arg1[%c0_4, %c0_5, %c8] : memref<1x8x288xbf16, #tpu.memory_space<vmem>>, vector<1x8x216xbf16>
    %4 = vector.shape_cast %3 : vector<1x8x216xbf16> to vector<8x216xbf16>
    %c8_6 = arith.constant 8 : index
    %c0_7 = arith.constant 0 : index
    %5 = vector.load %arg8[%c8_6, %c0_7] : memref<120x216xbf16, #tpu.memory_space<vmem>>, vector<8x216xbf16>
    tpu.vector_store %arg8[%c8_6, %c0_7], %4 {strides = array<i32>} : memref<120x216xbf16, #tpu.memory_space<vmem>>, vector<8x216xbf16>,
    %c0_8 = arith.constant 0 : index
    %c0_9 = arith.constant 0 : index
    %c16 = arith.constant 16 : index
    %6 = vector.load %arg1[%c0_8, %c0_9, %c16] : memref<1x8x288xbf16, #tpu.memory_space<vmem>>, vector<1x8x216xbf16>
    %7 = vector.shape_cast %6 : vector<1x8x216xbf16> to vector<8x216xbf16>
    %c16_10 = arith.constant 16 : index
    %c0_11 = arith.constant 0 : index
    %8 = vector.load %arg8[%c16_10, %c0_11] : memref<120x216xbf16, #tpu.memory_space<vmem>>, vector<8x216xbf16>
    tpu.vector_store %arg8[%c16_10, %c0_11], %7 {strides = array<i32>} : memref<120x216xbf16, #tpu.memory_space<vmem>>, vector<8x216xbf16>,
    %c0_12 = arith.constant 0 : index
    %c0_13 = arith.constant 0 : index
    %c24 = arith.constant 24 : index
    %9 = vector.load %arg1[%c0_12, %c0_13, %c24] : memref<1x8x288xbf16, #tpu.memory_space<vmem>>, vector<1x8x216xbf16>
    %10 = vector.shape_cast %9 : vector<1x8x216xbf16> to vector<8x216xbf16>
    %c24_14 = arith.constant 24 : index
    %c0_15 = arith.constant 0 : index
    %11 = vector.load %arg8[%c24_14, %c0_15] : memref<120x216xbf16, #tpu.memory_space<vmem>>, vector<8x216xbf16>
    tpu.vector_store %arg8[%c24_14, %c0_15], %10 {strides = array<i32>} : memref<120x216xbf16, #tpu.memory_space<vmem>>, vector<8x216xbf16>,
    %c0_16 = arith.constant 0 : index
    %c0_17 = arith.constant 0 : index
    %c32 = arith.constant 32 : index
    %12 = vector.load %arg1[%c0_16, %c0_17, %c32] : memref<1x8x288xbf16, #tpu.memory_space<vmem>>, vector<1x8x216xbf16>
    %13 = vector.shape_cast %12 : vector<1x8x216xbf16> to vector<8x216xbf16>
    %c32_18 = arith.constant 32 : index
    %c0_19 = arith.constant 0 : index
    %14 = vector.load %arg8[%c32_18, %c0_19] : memref<120x216xbf16, #tpu.memory_space<vmem>>, vector<8x216xbf16>
    tpu.vector_store %arg8[%c32_18, %c0_19], %13 {strides = array<i32>} : memref<120x216xbf16, #tpu.memory_space<vmem>>, vector<8x216xbf16>,
    %c0_20 = arith.constant 0 : index
    %c0_21 = arith.constant 0 : index
    %c40 = arith.constant 40 : index
    %15 = vector.load %arg1[%c0_20, %c0_21, %c40] : memref<1x8x288xbf16, #tpu.memory_space<vmem>>, vector<1x8x216xbf16>
    %16 = vector.shape_cast %15 : vector<1x8x216xbf16> to vector<8x216xbf16>
    %c40_22 = arith.constant 40 : index
    %c0_23 = arith.constant 0 : index
    %17 = vector.load %arg8[%c40_22, %c0_23] : memref<120x216xbf16, #tpu.memory_space<vmem>>, vector<8x216xbf16>
    tpu.vector_store %arg8[%c40_22, %c0_23], %16 {strides = array<i32>} : memref<120x216xbf16, #tpu.memory_space<vmem>>, vector<8x216xbf16>,
    %c0_24 = arith.constant 0 : index
    %c0_25 = arith.constant 0 : index
    %c48 = arith.constant 48 : index
    %18 = vector.load %arg1[%c0_24, %c0_25, %c48] : memref<1x8x288xbf16, #tpu.memory_space<vmem>>, vector<1x8x216xbf16>
    %19 = vector.shape_cast %18 : vector<1x8x216xbf16> to vector<8x216xbf16>
    %c48_26 = arith.constant 48 : index
    %c0_27 = arith.constant 0 : index
    %20 = vector.load %arg8[%c48_26, %c0_27] : memref<120x216xbf16, #tpu.memory_space<vmem>>, vector<8x216xbf16>
    tpu.vector_store %arg8[%c48_26, %c0_27], %19 {strides = array<i32>} : memref<120x216xbf16, #tpu.memory_space<vmem>>, vector<8x216xbf16>,
    %c0_28 = arith.constant 0 : index
    %c0_29 = arith.constant 0 : index
    %c56 = arith.constant 56 : index
    %21 = vector.load %arg1[%c0_28, %c0_29, %c56] : memref<1x8x288xbf16, #tpu.memory_space<vmem>>, vector<1x8x216xbf16>
    %22 = vector.shape_cast %21 : vector<1x8x216xbf16> to vector<8x216xbf16>
    %c56_30 = arith.constant 56 : index
    %c0_31 = arith.constant 0 : index
    %23 = vector.load %arg8[%c56_30, %c0_31] : memref<120x216xbf16, #tpu.memory_space<vmem>>, vector<8x216xbf16>
    tpu.vector_store %arg8[%c56_30, %c0_31], %22 {strides = array<i32>} : memref<120x216xbf16, #tpu.memory_space<vmem>>, vector<8x216xbf16>,
    %c0_32 = arith.constant 0 : index
    %c0_33 = arith.constant 0 : index
    %c64 = arith.constant 64 : index
    %24 = vector.load %arg1[%c0_32, %c0_33, %c64] : memref<1x8x288xbf16, #tpu.memory_space<vmem>>, vector<1x8x216xbf16>
    %25 = vector.shape_cast %24 : vector<1x8x216xbf16> to vector<8x216xbf16>
    %c64_34 = arith.constant 64 : index
    %c0_35 = arith.constant 0 : index
    %26 = vector.load %arg8[%c64_34, %c0_35] : memref<120x216xbf16, #tpu.memory_space<vmem>>, vector<8x216xbf16>
    tpu.vector_store %arg8[%c64_34, %c0_35], %25 {strides = array<i32>} : memref<120x216xbf16, #tpu.memory_space<vmem>>, vector<8x216xbf16>,
    %c0_36 = arith.constant 0 : index
    %c0_37 = arith.constant 0 : index
    %c72 = arith.constant 72 : index
    %27 = vector.load %arg1[%c0_36, %c0_37, %c72] : memref<1x8x288xbf16, #tpu.memory_space<vmem>>, vector<1x8x216xbf16>
    %28 = vector.shape_cast %27 : vector<1x8x216xbf16> to vector<8x216xbf16>
    %c72_38 = arith.constant 72 : index
    %c0_39 = arith.constant 0 : index
    %29 = vector.load %arg8[%c72_38, %c0_39] : memref<120x216xbf16, #tpu.memory_space<vmem>>, vector<8x216xbf16>
    tpu.vector_store %arg8[%c72_38, %c0_39], %28 {strides = array<i32>} : memref<120x216xbf16, #tpu.memory_space<vmem>>, vector<8x216xbf16>,
    %c0_40 = arith.constant 0 : index
    %c0_41 = arith.constant 0 : index
    %30 = vector.load %arg2[%c0_40, %c0_41] : memref<24x80xbf16, #tpu.memory_space<vmem>>, vector<24x80xbf16>
    %c0_42 = arith.constant 0 : index
    %c0_43 = arith.constant 0 : index
    %31 = vector.load %arg8[%c0_42, %c0_43] : memref<120x216xbf16, #tpu.memory_space<vmem>>, vector<80x216xbf16>
    %cst = arith.constant dense<0.000000e+00> : vector<24x216xf32>
    %32 = tpu.matmul %30, %31, %cst {dimension_numbers = #tpu.dot_dimension_numbers<[1], [0], [0], [1], [0, 0, 1, 1], [], []>} : vector<24x80xbf16>, vector<80x216xbf16>, vector<24x216xf32> -> vector<24x216xf32>
    %c0_44 = arith.constant 0 : index
    %c0_45 = arith.constant 0 : index
    %33 = vector.load %arg3[%c0_44, %c0_45] : memref<24x1xf32, #tpu.memory_space<vmem>>, vector<24x1xf32>
    %34 = vector.broadcast %33 : vector<24x1xf32> to vector<24x216xf32>
    %35 = arith.addf %32, %34 : vector<24x216xf32>
    %36 = arith.negf %35 : vector<24x216xf32>
    %37 = math.exp %36 : vector<24x216xf32>
    %cst_46 = arith.constant 1.000000e+00 : f32
    %38 = vector.broadcast %cst_46 : f32 to vector<24x216xf32>
    %39 = arith.addf %38, %37 : vector<24x216xf32>
    %40 = arith.divf %38, %39 : vector<24x216xf32>
    %41 = arith.truncf %40 : vector<24x216xf32> to vector<24x216xbf16>
    %cst_47 = arith.constant 0.000000e+00 : bf16
    %42 = vector.broadcast %cst_47 : bf16 to vector<24x32xbf16>
    %c0_48 = arith.constant 0 : index
    %c0_49 = arith.constant 0 : index
    %43 = vector.load %arg7[%c0_48, %c0_49] : memref<24x280xbf16, #tpu.memory_space<vmem>>, vector<24x32xbf16>
    tpu.vector_store %arg7[%c0_48, %c0_49], %42 {strides = array<i32>} : memref<24x280xbf16, #tpu.memory_space<vmem>>, vector<24x32xbf16>,
    %c0_50 = arith.constant 0 : index
    %c32_51 = arith.constant 32 : index
    %44 = vector.load %arg7[%c0_50, %c32_51] : memref<24x280xbf16, #tpu.memory_space<vmem>>, vector<24x216xbf16>
    tpu.vector_store %arg7[%c0_50, %c32_51], %41 {strides = array<i32>} : memref<24x280xbf16, #tpu.memory_space<vmem>>, vector<24x216xbf16>,
    %cst_52 = arith.constant 0.000000e+00 : bf16
    %45 = vector.broadcast %cst_52 : bf16 to vector<24x32xbf16>
    %c0_53 = arith.constant 0 : index
    %c248 = arith.constant 248 : index
    %46 = vector.load %arg7[%c0_53, %c248] : memref<24x280xbf16, #tpu.memory_space<vmem>>, vector<24x32xbf16>
    tpu.vector_store %arg7[%c0_53, %c248], %45 {strides = array<i32>} : memref<24x280xbf16, #tpu.memory_space<vmem>>, vector<24x32xbf16>,
    %c0_54 = arith.constant 0 : index
    %c0_55 = arith.constant 0 : index
    %47 = vector.load %arg7[%c0_54, %c0_55] : memref<24x280xbf16, #tpu.memory_space<vmem>>, vector<24x128xbf16>
    %c0_56 = arith.constant 0 : index
    %c0_57 = arith.constant 0 : index
    %48 = vector.load %arg8[%c0_56, %c0_57] : memref<120x216xbf16, #tpu.memory_space<vmem>>, vector<24x128xbf16>
    tpu.vector_store %arg8[%c0_56, %c0_57], %47 {strides = array<i32>} : memref<120x216xbf16, #tpu.memory_space<vmem>>, vector<24x128xbf16>,
    %c0_58 = arith.constant 0 : index
    %c8_59 = arith.constant 8 : index
    %49 = vector.load %arg7[%c0_58, %c8_59] : memref<24x280xbf16, #tpu.memory_space<vmem>>, vector<24x128xbf16>
    %c24_60 = arith.constant 24 : index
    %c0_61 = arith.constant 0 : index
    %50 = vector.load %arg8[%c24_60, %c0_61] : memref<120x216xbf16, #tpu.memory_space<vmem>>, vector<24x128xbf16>
    tpu.vector_store %arg8[%c24_60, %c0_61], %49 {strides = array<i32>} : memref<120x216xbf16, #tpu.memory_space<vmem>>, vector<24x128xbf16>,
    %c0_62 = arith.constant 0 : index
    %c16_63 = arith.constant 16 : index
    %51 = vector.load %arg7[%c0_62, %c16_63] : memref<24x280xbf16, #tpu.memory_space<vmem>>, vector<24x128xbf16>
    %c48_64 = arith.constant 48 : index
    %c0_65 = arith.constant 0 : index
    %52 = vector.load %arg8[%c48_64, %c0_65] : memref<120x216xbf16, #tpu.memory_space<vmem>>, vector<24x128xbf16>
    tpu.vector_store %arg8[%c48_64, %c0_65], %51 {strides = array<i32>} : memref<120x216xbf16, #tpu.memory_space<vmem>>, vector<24x128xbf16>,
    %c0_66 = arith.constant 0 : index
    %c24_67 = arith.constant 24 : index
    %53 = vector.load %arg7[%c0_66, %c24_67] : memref<24x280xbf16, #tpu.memory_space<vmem>>, vector<24x128xbf16>
    %c72_68 = arith.constant 72 : index
    %c0_69 = arith.constant 0 : index
    %54 = vector.load %arg8[%c72_68, %c0_69] : memref<120x216xbf16, #tpu.memory_space<vmem>>, vector<24x128xbf16>
    tpu.vector_store %arg8[%c72_68, %c0_69], %53 {strides = array<i32>} : memref<120x216xbf16, #tpu.memory_space<vmem>>, vector<24x128xbf16>,
    %c0_70 = arith.constant 0 : index
    %c32_71 = arith.constant 32 : index
    %55 = vector.load %arg7[%c0_70, %c32_71] : memref<24x280xbf16, #tpu.memory_space<vmem>>, vector<24x128xbf16>
    %c96 = arith.constant 96 : index
    %c0_72 = arith.constant 0 : index
    %56 = vector.load %arg8[%c96, %c0_72] : memref<120x216xbf16, #tpu.memory_space<vmem>>, vector<24x128xbf16>
    tpu.vector_store %arg8[%c96, %c0_72], %55 {strides = array<i32>} : memref<120x216xbf16, #tpu.memory_space<vmem>>, vector<24x128xbf16>,
    %c0_73 = arith.constant 0 : index
    %c0_74 = arith.constant 0 : index
    %57 = vector.load %arg4[%c0_73, %c0_74] : memref<8x480xbf16, #tpu.memory_space<vmem>>, vector<8x120xbf16>
    %c0_75 = arith.constant 0 : index
    %c0_76 = arith.constant 0 : index
    %58 = vector.load %arg8[%c0_75, %c0_76] : memref<120x216xbf16, #tpu.memory_space<vmem>>, vector<120x128xbf16>
    %cst_77 = arith.constant dense<0.000000e+00> : vector<8x128xf32>
    %59 = tpu.matmul %57, %58, %cst_77 {dimension_numbers = #tpu.dot_dimension_numbers<[1], [0], [0], [1], [0, 0, 1, 1], [], []>} : vector<8x120xbf16>, vector<120x128xbf16>, vector<8x128xf32> -> vector<8x128xf32>
    %c0_78 = arith.constant 0 : index
    %c40_79 = arith.constant 40 : index
    %60 = vector.load %arg7[%c0_78, %c40_79] : memref<24x280xbf16, #tpu.memory_space<vmem>>, vector<24x128xbf16>
    %c0_80 = arith.constant 0 : index
    %c0_81 = arith.constant 0 : index
    %61 = vector.load %arg8[%c0_80, %c0_81] : memref<120x216xbf16, #tpu.memory_space<vmem>>, vector<24x128xbf16>
    tpu.vector_store %arg8[%c0_80, %c0_81], %60 {strides = array<i32>} : memref<120x216xbf16, #tpu.memory_space<vmem>>, vector<24x128xbf16>,
    %c0_82 = arith.constant 0 : index
    %c48_83 = arith.constant 48 : index
    %62 = vector.load %arg7[%c0_82, %c48_83] : memref<24x280xbf16, #tpu.memory_space<vmem>>, vector<24x128xbf16>
    %c24_84 = arith.constant 24 : index
    %c0_85 = arith.constant 0 : index
    %63 = vector.load %arg8[%c24_84, %c0_85] : memref<120x216xbf16, #tpu.memory_space<vmem>>, vector<24x128xbf16>
    tpu.vector_store %arg8[%c24_84, %c0_85], %62 {strides = array<i32>} : memref<120x216xbf16, #tpu.memory_space<vmem>>, vector<24x128xbf16>,
    %c0_86 = arith.constant 0 : index
    %c56_87 = arith.constant 56 : index
    %64 = vector.load %arg7[%c0_86, %c56_87] : memref<24x280xbf16, #tpu.memory_space<vmem>>, vector<24x128xbf16>
    %c48_88 = arith.constant 48 : index
    %c0_89 = arith.constant 0 : index
    %65 = vector.load %arg8[%c48_88, %c0_89] : memref<120x216xbf16, #tpu.memory_space<vmem>>, vector<24x128xbf16>
    tpu.vector_store %arg8[%c48_88, %c0_89], %64 {strides = array<i32>} : memref<120x216xbf16, #tpu.memory_space<vmem>>, vector<24x128xbf16>,
    %c0_90 = arith.constant 0 : index
    %c64_91 = arith.constant 64 : index
    %66 = vector.load %arg7[%c0_90, %c64_91] : memref<24x280xbf16, #tpu.memory_space<vmem>>, vector<24x128xbf16>
    %c72_92 = arith.constant 72 : index
    %c0_93 = arith.constant 0 : index
    %67 = vector.load %arg8[%c72_92, %c0_93] : memref<120x216xbf16, #tpu.memory_space<vmem>>, vector<24x128xbf16>
    tpu.vector_store %arg8[%c72_92, %c0_93], %66 {strides = array<i32>} : memref<120x216xbf16, #tpu.memory_space<vmem>>, vector<24x128xbf16>,
    %c0_94 = arith.constant 0 : index
    %c72_95 = arith.constant 72 : index
    %68 = vector.load %arg7[%c0_94, %c72_95] : memref<24x280xbf16, #tpu.memory_space<vmem>>, vector<24x128xbf16>
    %c96_96 = arith.constant 96 : index
    %c0_97 = arith.constant 0 : index
    %69 = vector.load %arg8[%c96_96, %c0_97] : memref<120x216xbf16, #tpu.memory_space<vmem>>, vector<24x128xbf16>
    tpu.vector_store %arg8[%c96_96, %c0_97], %68 {strides = array<i32>} : memref<120x216xbf16, #tpu.memory_space<vmem>>, vector<24x128xbf16>,
    %c0_98 = arith.constant 0 : index
    %c120 = arith.constant 120 : index
    %70 = vector.load %arg4[%c0_98, %c120] : memref<8x480xbf16, #tpu.memory_space<vmem>>, vector<8x120xbf16>
    %c0_99 = arith.constant 0 : index
    %c0_100 = arith.constant 0 : index
    %71 = vector.load %arg8[%c0_99, %c0_100] : memref<120x216xbf16, #tpu.memory_space<vmem>>, vector<120x128xbf16>
    %cst_101 = arith.constant dense<0.000000e+00> : vector<8x128xf32>
    %72 = tpu.matmul %70, %71, %cst_101 {dimension_numbers = #tpu.dot_dimension_numbers<[1], [0], [0], [1], [0, 0, 1, 1], [], []>} : vector<8x120xbf16>, vector<120x128xbf16>, vector<8x128xf32> -> vector<8x128xf32>
    %73 = arith.addf %59, %72 : vector<8x128xf32>
    %c0_102 = arith.constant 0 : index
    %c80 = arith.constant 80 : index
    %74 = vector.load %arg7[%c0_102, %c80] : memref<24x280xbf16, #tpu.memory_space<vmem>>, vector<24x128xbf16>
    %c0_103 = arith.constant 0 : index
    %c0_104 = arith.constant 0 : index
    %75 = vector.load %arg8[%c0_103, %c0_104] : memref<120x216xbf16, #tpu.memory_space<vmem>>, vector<24x128xbf16>
    tpu.vector_store %arg8[%c0_103, %c0_104], %74 {strides = array<i32>} : memref<120x216xbf16, #tpu.memory_space<vmem>>, vector<24x128xbf16>,
    %c0_105 = arith.constant 0 : index
    %c88 = arith.constant 88 : index
    %76 = vector.load %arg7[%c0_105, %c88] : memref<24x280xbf16, #tpu.memory_space<vmem>>, vector<24x128xbf16>
    %c24_106 = arith.constant 24 : index
    %c0_107 = arith.constant 0 : index
    %77 = vector.load %arg8[%c24_106, %c0_107] : memref<120x216xbf16, #tpu.memory_space<vmem>>, vector<24x128xbf16>
    tpu.vector_store %arg8[%c24_106, %c0_107], %76 {strides = array<i32>} : memref<120x216xbf16, #tpu.memory_space<vmem>>, vector<24x128xbf16>,
    %c0_108 = arith.constant 0 : index
    %c96_109 = arith.constant 96 : index
    %78 = vector.load %arg7[%c0_108, %c96_109] : memref<24x280xbf16, #tpu.memory_space<vmem>>, vector<24x128xbf16>
    %c48_110 = arith.constant 48 : index
    %c0_111 = arith.constant 0 : index
    %79 = vector.load %arg8[%c48_110, %c0_111] : memref<120x216xbf16, #tpu.memory_space<vmem>>, vector<24x128xbf16>
    tpu.vector_store %arg8[%c48_110, %c0_111], %78 {strides = array<i32>} : memref<120x216xbf16, #tpu.memory_space<vmem>>, vector<24x128xbf16>,
    %c0_112 = arith.constant 0 : index
    %c104 = arith.constant 104 : index
    %80 = vector.load %arg7[%c0_112, %c104] : memref<24x280xbf16, #tpu.memory_space<vmem>>, vector<24x128xbf16>
    %c72_113 = arith.constant 72 : index
    %c0_114 = arith.constant 0 : index
    %81 = vector.load %arg8[%c72_113, %c0_114] : memref<120x216xbf16, #tpu.memory_space<vmem>>, vector<24x128xbf16>
    tpu.vector_store %arg8[%c72_113, %c0_114], %80 {strides = array<i32>} : memref<120x216xbf16, #tpu.memory_space<vmem>>, vector<24x128xbf16>,
    %c0_115 = arith.constant 0 : index
    %c112 = arith.constant 112 : index
    %82 = vector.load %arg7[%c0_115, %c112] : memref<24x280xbf16, #tpu.memory_space<vmem>>, vector<24x128xbf16>
    %c96_116 = arith.constant 96 : index
    %c0_117 = arith.constant 0 : index
    %83 = vector.load %arg8[%c96_116, %c0_117] : memref<120x216xbf16, #tpu.memory_space<vmem>>, vector<24x128xbf16>
    tpu.vector_store %arg8[%c96_116, %c0_117], %82 {strides = array<i32>} : memref<120x216xbf16, #tpu.memory_space<vmem>>, vector<24x128xbf16>,
    %c0_118 = arith.constant 0 : index
    %c240 = arith.constant 240 : index
    %84 = vector.load %arg4[%c0_118, %c240] : memref<8x480xbf16, #tpu.memory_space<vmem>>, vector<8x120xbf16>
    %c0_119 = arith.constant 0 : index
    %c0_120 = arith.constant 0 : index
    %85 = vector.load %arg8[%c0_119, %c0_120] : memref<120x216xbf16, #tpu.memory_space<vmem>>, vector<120x128xbf16>
    %cst_121 = arith.constant dense<0.000000e+00> : vector<8x128xf32>
    %86 = tpu.matmul %84, %85, %cst_121 {dimension_numbers = #tpu.dot_dimension_numbers<[1], [0], [0], [1], [0, 0, 1, 1], [], []>} : vector<8x120xbf16>, vector<120x128xbf16>, vector<8x128xf32> -> vector<8x128xf32>
    %87 = arith.addf %73, %86 : vector<8x128xf32>
    %c0_122 = arith.constant 0 : index
    %c120_123 = arith.constant 120 : index
    %88 = vector.load %arg7[%c0_122, %c120_123] : memref<24x280xbf16, #tpu.memory_space<vmem>>, vector<24x128xbf16>
    %c0_124 = arith.constant 0 : index
    %c0_125 = arith.constant 0 : index
    %89 = vector.load %arg8[%c0_124, %c0_125] : memref<120x216xbf16, #tpu.memory_space<vmem>>, vector<24x128xbf16>
    tpu.vector_store %arg8[%c0_124, %c0_125], %88 {strides = array<i32>} : memref<120x216xbf16, #tpu.memory_space<vmem>>, vector<24x128xbf16>,
    %c0_126 = arith.constant 0 : index
    %c128 = arith.constant 128 : index
    %90 = vector.load %arg7[%c0_126, %c128] : memref<24x280xbf16, #tpu.memory_space<vmem>>, vector<24x128xbf16>
    %c24_127 = arith.constant 24 : index
    %c0_128 = arith.constant 0 : index
    %91 = vector.load %arg8[%c24_127, %c0_128] : memref<120x216xbf16, #tpu.memory_space<vmem>>, vector<24x128xbf16>
    tpu.vector_store %arg8[%c24_127, %c0_128], %90 {strides = array<i32>} : memref<120x216xbf16, #tpu.memory_space<vmem>>, vector<24x128xbf16>,
    %c0_129 = arith.constant 0 : index
    %c136 = arith.constant 136 : index
    %92 = vector.load %arg7[%c0_129, %c136] : memref<24x280xbf16, #tpu.memory_space<vmem>>, vector<24x128xbf16>
    %c48_130 = arith.constant 48 : index
    %c0_131 = arith.constant 0 : index
    %93 = vector.load %arg8[%c48_130, %c0_131] : memref<120x216xbf16, #tpu.memory_space<vmem>>, vector<24x128xbf16>
    tpu.vector_store %arg8[%c48_130, %c0_131], %92 {strides = array<i32>} : memref<120x216xbf16, #tpu.memory_space<vmem>>, vector<24x128xbf16>,
    %c0_132 = arith.constant 0 : index
    %c144 = arith.constant 144 : index
    %94 = vector.load %arg7[%c0_132, %c144] : memref<24x280xbf16, #tpu.memory_space<vmem>>, vector<24x128xbf16>
    %c72_133 = arith.constant 72 : index
    %c0_134 = arith.constant 0 : index
    %95 = vector.load %arg8[%c72_133, %c0_134] : memref<120x216xbf16, #tpu.memory_space<vmem>>, vector<24x128xbf16>
    tpu.vector_store %arg8[%c72_133, %c0_134], %94 {strides = array<i32>} : memref<120x216xbf16, #tpu.memory_space<vmem>>, vector<24x128xbf16>,
    %c0_135 = arith.constant 0 : index
    %c152 = arith.constant 152 : index
    %96 = vector.load %arg7[%c0_135, %c152] : memref<24x280xbf16, #tpu.memory_space<vmem>>, vector<24x128xbf16>
    %c96_136 = arith.constant 96 : index
    %c0_137 = arith.constant 0 : index
    %97 = vector.load %arg8[%c96_136, %c0_137] : memref<120x216xbf16, #tpu.memory_space<vmem>>, vector<24x128xbf16>
    tpu.vector_store %arg8[%c96_136, %c0_137], %96 {strides = array<i32>} : memref<120x216xbf16, #tpu.memory_space<vmem>>, vector<24x128xbf16>,
    %c0_138 = arith.constant 0 : index
    %c360 = arith.constant 360 : index
    %98 = vector.load %arg4[%c0_138, %c360] : memref<8x480xbf16, #tpu.memory_space<vmem>>, vector<8x120xbf16>
    %c0_139 = arith.constant 0 : index
    %c0_140 = arith.constant 0 : index
    %99 = vector.load %arg8[%c0_139, %c0_140] : memref<120x216xbf16, #tpu.memory_space<vmem>>, vector<120x128xbf16>
    %cst_141 = arith.constant dense<0.000000e+00> : vector<8x128xf32>
    %100 = tpu.matmul %98, %99, %cst_141 {dimension_numbers = #tpu.dot_dimension_numbers<[1], [0], [0], [1], [0, 0, 1, 1], [], []>} : vector<8x120xbf16>, vector<120x128xbf16>, vector<8x128xf32> -> vector<8x128xf32>
    %101 = arith.addf %87, %100 : vector<8x128xf32>
    %c0_142 = arith.constant 0 : index
    %c0_143 = arith.constant 0 : index
    %102 = vector.load %arg5[%c0_142, %c0_143] : memref<8x1xf32, #tpu.memory_space<vmem>>, vector<8x1xf32>
    %103 = vector.broadcast %102 : vector<8x1xf32> to vector<8x128xf32>
    %104 = arith.addf %101, %103 : vector<8x128xf32>
    %105 = arith.truncf %104 : vector<8x128xf32> to vector<8x128xbf16>
    %c0_144 = arith.constant 0 : index
    %c0_145 = arith.constant 0 : index
    %c0_146 = arith.constant 0 : index
    %106 = vector.load %arg6[%c0_144, %c0_145, %c0_146] : memref<1x8x128xbf16, #tpu.memory_space<vmem>>, vector<1x8x128xbf16>
    %107 = vector.shape_cast %106 : vector<1x8x128xbf16> to vector<8x128xbf16>
    %108 = vector.shape_cast %105 : vector<8x128xbf16> to vector<1x8x128xbf16>
    tpu.vector_store %arg6[%c0_144, %c0_145, %c0_146], %108 {strides = array<i32>} : memref<1x8x128xbf16, #tpu.memory_space<vmem>>, vector<1x8x128xbf16>,
    return
  }
  func.func @transform_0(%arg0: i32) -> (i32, i32, i32) {
    %c0_i32 = arith.constant 0 : i32
    %c0_i32_0 = arith.constant 0 : i32
    %c0_i32_1 = arith.constant 0 : i32
    return %arg0, %c0_i32, %c0_i32_0 : i32, i32, i32
  }
  func.func @transform_1(%arg0: i32) -> (i32, i32) {
    %c0_i32 = arith.constant 0 : i32
    %c0_i32_0 = arith.constant 0 : i32
    %c0_i32_1 = arith.constant 0 : i32
    return %c0_i32, %c0_i32_0 : i32, i32
  }
  func.func @transform_2(%arg0: i32) -> (i32, i32) {
    %c0_i32 = arith.constant 0 : i32
    %c0_i32_0 = arith.constant 0 : i32
    %c0_i32_1 = arith.constant 0 : i32
    return %c0_i32, %c0_i32_0 : i32, i32
  }
  func.func @transform_3(%arg0: i32) -> (i32, i32) {
    %c0_i32 = arith.constant 0 : i32
    %c0_i32_0 = arith.constant 0 : i32
    %c0_i32_1 = arith.constant 0 : i32
    return %c0_i32, %c0_i32_0 : i32, i32
  }
  func.func @transform_4(%arg0: i32) -> (i32, i32) {
    %c0_i32 = arith.constant 0 : i32
    %c0_i32_0 = arith.constant 0 : i32
    %c0_i32_1 = arith.constant 0 : i32
    return %c0_i32, %c0_i32_0 : i32, i32
  }
  func.func @transform_5(%arg0: i32) -> (i32, i32, i32) {
    %c0_i32 = arith.constant 0 : i32
    %c0_i32_0 = arith.constant 0 : i32
    %c0_i32_1 = arith.constant 0 : i32
    return %arg0, %c0_i32, %c0_i32_0 : i32, i32, i32
  }
}

</mosaic_0001>

<bundles_post_ra>
// kernel: tpu_custom_call.1
= control target key start
LH: loop header
LB: loop body
LE: loop exit
PB: predicated region body
PF: predicated region fallthrough
CT: control target
= control target key end

     0   :  { %10 = vsyncpa [#allocation5], 0  ;;  %s2048_s0 = inlined_call_operand.vmem [shape: bf16[1,8,288], index: 0, kind: input, shape index: {}]   ;;  %s2049_s1 = inlined_call_operand.hbm [shape: bf16[24,80], index: 1, kind: input, shape index: {}]   ;;  %s2050_s2 = inlined_call_operand.vmem [shape: f32[24,1], index: 2, kind: input, shape index: {}]   ;;  %s2051_s3 = inlined_call_operand.vmem [shape: bf16[8,480], index: 3, kind: input, shape index: {}]   ;;  %s2052_s4 = inlined_call_operand.vmem [shape: f32[8,1], index: 4, kind: input, shape index: {}]   ;;  %s2053_s5 = inlined_call_operand.hbm [shape: bf16[1,8,128], index: 5, kind: output, shape index: {}]  }
   0x1   :  { %11 = vsyncpa [#allocation6], 0  ;;  %s18_s20 = sshll.u32 %s2049_s1, 4  ;;  %s1568_s21 = smov [#allocation4]   ;;  %s19_s20 = int_to_ptr.hbm [resolvable:$true] %s18_s20 }
   0x2   :  { %s20_s22 = sshll.u32 %s1568_s21, 4  ;;  %s1569_s23 = smov 64   ;;  %s21_s22 = int_to_ptr.vmem [resolvable:$true] %s20_s22 }
   0x3   :  { %s1570_s24 = smov 4  }
   0x4   :  { %26 = dma.hbm_to_vmem [thread:$0]  %s19_s20, 192, %s21_s22, [#allocation5], %s1569_s23, %s1569_s23, %s1570_s24  }
   0x5   :  { %1564 = dma.done.wait [#allocation5], 192  }
   0x6   :  { %1565 = vsyncadd [#allocation5], 4294967104  ;;  %v134_v0 = vld [vmem:[%s2048_s0] sm:$0xff]  ;;  %s1571_s27 = smov 56   ;;  %s1572_s1 = smov 80   ;;  %vm2054_vm0 = vcmask 1043456  }
   0x7   :  { %138 = vrot.lane.b32.xlu1 %v134_v0, %s1571_s27  ;;  %123 = vrot.lane.b32.xlu0 %v134_v0, %s1569_s23  ;;  %v135_v1 = vld [vmem:[%s2048_s0 + $0x8] sm:$0xf]  ;;  %s1573_s11 = smov 72   ;;  %s1574_s12 = smov 96   ;;  %vm40_vm1 = vcmask 719876   ;;  %vm2055_vm3 = vcmask 654336  }
   0x8   :  { %92 = vrot.lane.b32.xlu2 %v134_v0, %s1572_s1  ;;  %v120_v2 = vld [vmem:[%s2048_s0 + $0x8] sm:$0xf]  ;;  %s1575_s13 = smov 88   ;;  %s1576_s14 = smov 112   ;;  %vm1651_vm2 = vmor %vm40_vm1, %vm2054_vm0  ;;  %vm75_vm4 = vcmask 785408   ;;  %vm66_vm5 = vcmask 850944  }
   0x9   :  { %v89_v3 = vld [vmem:[%s2048_s0 + $0x8] sm:$0xf]  ;;  %s1577_s15 = smov 104   ;;  %s1578_s16 = smov 120   ;;  %42 = vst.msk [vmem:[#allocation3] sm:$0xff] %vm1651_vm2, %v134_v0  ;;  %vm2059_vm6 = vcmask 457728  }
   0xa   :  { %v105_v4 = vld [vmem:[%s2048_s0 + $0x8] sm:$0xf]  ;;  %vm2057_vm7 = vcmask 523264   ;;  %vm2058_vm8 = vcmask 588800   ;;  %v1579_v35 = vmov 0   ;;  %vm84_vm9 = vcmask 719872  }
   0xb   :  { %v163_v34 = vld [vmem:[%s2050_s2 + $0x8] sm:$0xff]  ;;  %1491 = vset.pattern.permute.xlu0 %v1579_v35  ;;  %1490 = vset.pattern.permute.xlu2 %v1579_v35  ;;  %vm57_vm10 = vcmask 916480   ;;  %vm2056_vm11 = vcmask 982016   ;;  %v162_v58 = vld [vmem:[%s2050_s2] sm:$0xff]  ;;  %v164_v59 = vld [vmem:[%s2050_s2 + $0x10] sm:$0xff]  ;;  %vm398_vm12 = vcmask 257024  }
   0xc   :  { %1489 = vset.pattern.permute.xlu1 %v1579_v35  ;;  %v1431_v5 = vld [vmem:[#allocation4] sm:$0xff]  ;;  %399 = vst.msk [vmem:[#allocation2] sm:$0xf] %vm398_vm12, %v1579_v35  ;;  %s1580_s2 = smov 32   ;;  %s1581_s22 = smov 24  }
   0xd   :  { %400 = vst.msk [vmem:[#allocation2 + $0xc] sm:$0xf] %vm398_vm12, %v1579_v35  ;;  %s1582_s24 = smov 16   ;;  %s1583_s25 = smov 40  }
   0xe   :  { %401 = vst.msk [vmem:[#allocation2 + $0x18] sm:$0xf] %vm398_vm12, %v1579_v35  ;;  %s1585_s29 = smov 8  }
   0xf   :  { %140 = vrot.lane.b32.xlu1 %v135_v1, %s1571_s27  ;;  %125 = vrot.lane.b32.xlu0 %v120_v2, %s1569_s23 }
  0x10   :  { %94 = vrot.lane.b32.xlu2 %v89_v3, %s1572_s1 }
  0x17   :  { %110 = vrot.lane.b32.xlu1 %v105_v4, %s1573_s11  ;;  %108 = vrot.lane.b32.xlu0 %v134_v0, %s1573_s11 }
  0x18   :  { %72 = vrot.lane.b32.xlu2 %v134_v0, %s1574_s12 }
  0x1f   :  { %81 = vrot.lane.b32.xlu0 %v134_v0, %s1575_s13  ;;  %54 = vrot.lane.b32.xlu1 %v134_v0, %s1576_s14 }
  0x20   :  { %63 = vrot.lane.b32.xlu2 %v134_v0, %s1577_s15 }
  0x27   :  { %45 = vrot.lane.b32.xlu0 %v134_v0, %s1578_s16  ;;  %177 = vperm.xlu1 %1489, %v164_v59  }
  0x28   :  { %167 = vperm.xlu2 %1490, %v162_v58  }
  0x2f   :  { %172 = vperm.xlu0 %1491, %v163_v34  }
  0x62   :  { %v93_v6 = vpop.permute.xlu2 %92 }
  0x63   :  { %v96_v7 = vrot.slane %v93_v6, 4 }
  0x6a   :  { %v95_v8 = vpop.permute.xlu2 %94 }
  0x6b   :  { %v97_v9 = vrot.slane %v95_v8, 4 }
  0x6d   :  { %v99_v10 = vsel %vm2054_vm0, %v96_v7, %v97_v9 }
  0x6e   :  { %v101_v11 = vsel %vm2055_vm3, %v93_v6, %v99_v10  ;;  %v1267_v10 = vld [vmem:[#allocation3] sm:$0xf] }
  0x6f   :  { %103 = vst.msk [vmem:[#allocation3 + $0x30] sm:$0xff] %vm1651_vm2, %v101_v11  ;;  %v1432_v11 = vld [vmem:[#allocation3 + $0x4] sm:$0xf] }
  0x72   :  { %v73_v12 = vpop.permute.xlu2 %72 }
  0x73   :  { %v74_v13 = vrot.slane %v73_v12, 4 }
  0x75   :  { %v76_v14 = vsel %vm75_vm4, %v73_v12, %v74_v13 }
  0x76   :  { %78 = vst.msk [vmem:[#allocation3 + $0x20] sm:$0xff] %vm1651_vm2, %v76_v14  ;;  %v1291_v50 = vld [vmem:[#allocation3 + $0x30] sm:$0xf]  ;;  %v1438_v51 = vld [vmem:[#allocation3 + $0x34] sm:$0xf] }
  0x79   :  { %v139_v15 = vpop.permute.xlu1 %138  ;;  %v124_v16 = vpop.permute.xlu0 %123 }
  0x7a   :  { %v64_v17 = vpop.permute.xlu2 %63  ;;  %v142_v22 = vrot.slane %v139_v15, 4  ;;  %v127_v23 = vrot.slane %v124_v16, 4 }
  0x7b   :  { %v65_v18 = vrot.slane %v64_v17, 4 }
  0x7d   :  { %v67_v19 = vsel %vm66_vm5, %v64_v17, %v65_v18  ;;  %v1283_v60 = vld [vmem:[#allocation3 + $0x20] sm:$0xf]  ;;  %v1436_v63 = vld [vmem:[#allocation3 + $0x24] sm:$0xf] }
  0x7e   :  { %69 = vst.msk [vmem:[#allocation3 + $0x18] sm:$0xff] %vm1651_vm2, %v67_v19 }
  0x81   :  { %v141_v20 = vpop.permute.xlu1 %140  ;;  %v126_v21 = vpop.permute.xlu0 %125 }
  0x82   :  { %v143_v24 = vrot.slane %v141_v20, 4  ;;  %v128_v25 = vrot.slane %v126_v21, 4  ;;  %v168_v19 = vpop.permute.xlu2 %167 }
  0x84   :  { %v144_v26 = vsel %vm2054_vm0, %v142_v22, %v143_v24  ;;  %v129_v27 = vsel %vm2054_vm0, %v127_v23, %v128_v25 }
  0x85   :  { %v146_v28 = vsel %vm2059_vm6, %v139_v15, %v144_v26  ;;  %v131_v29 = vsel %vm2057_vm7, %v124_v16, %v129_v27  ;;  %v1435_v3 = vld [vmem:[#allocation3 + $0x14] sm:$0xf0]  ;;  %v1277_v7 = vld [vmem:[#allocation3 + $0x18] sm:$0xf0]  ;;  %v151_v16 = vld [vmem:[#allocation4 + $0x8] sm:$0xf] }
  0x86   :  { %148 = vst.msk [vmem:[#allocation3 + $0x48] sm:$0xff] %vm1651_vm2, %v146_v28  ;;  %v185_v17 = vunpack.c.l.b16 %v151_v16 }
  0x87   :  { %133 = vst.msk [vmem:[#allocation3 + $0x40] sm:$0xff] %vm1651_vm2, %v131_v29 }
  0x88   :  { %v187_v18 = vpack.c.b16 %v185_v17, %v185_v17 }
  0x89   :  { %v111_v30 = vpop.permute.xlu1 %110  ;;  %v109_v31 = vpop.permute.xlu0 %108 }
  0x8a   :  { %v113_v32 = vrot.slane %v111_v30, 4  ;;  %v112_v33 = vrot.slane %v109_v31, 4 }
  0x8c   :  { %v114_v36 = vsel %vm2054_vm0, %v112_v33, %v113_v32 }
  0x8d   :  { %v116_v37 = vsel %vm2058_vm8, %v109_v31, %v114_v36  ;;  %v1441_v38 = vld [vmem:[#allocation3 + $0x44] sm:$0xf0]  ;;  %v1301_v39 = vld [vmem:[#allocation3 + $0x48] sm:$0xf0] }
  0x8e   :  { %118 = vst.msk [vmem:[#allocation3 + $0x38] sm:$0xff] %vm1651_vm2, %v116_v37  ;;  %v1299_v40 = vld [vmem:[#allocation3 + $0x40] sm:$0xf]  ;;  %v1440_v41 = vld [vmem:[#allocation3 + $0x44] sm:$0xf] }
  0x8f   :  { %v1300_v42 = vor.u32 %v1441_v38, %v1299_v40  ;;  %v1304_v43 = vor.u32 %v1440_v41, %v1301_v39 }
  0x91   :  { %248 = vmatpush.bf16.msra.mxu0 %v1300_v42  ;;  %266 = vmatpush.bf16.msra.mxu1 %v1304_v43  ;;  %v82_v44 = vpop.permute.xlu0 %81  ;;  %v55_v45 = vpop.permute.xlu1 %54 }
  0x92   :  { %v83_v46 = vrot.slane %v82_v44, 4  ;;  %v56_v47 = vrot.slane %v55_v45, 4 }
  0x94   :  { %v85_v48 = vsel %vm84_vm9, %v82_v44, %v83_v46  ;;  %v58_v49 = vsel %vm57_vm10, %v55_v45, %v56_v47 }
  0x95   :  { %87 = vst.msk [vmem:[#allocation3 + $0x28] sm:$0xff] %vm1651_vm2, %v85_v48  ;;  %v1439_v52 = vld [vmem:[#allocation3 + $0x34] sm:$0xf0]  ;;  %v1293_v53 = vld [vmem:[#allocation3 + $0x38] sm:$0xf0] }
  0x96   :  { %60 = vst.msk [vmem:[#allocation3 + $0x10] sm:$0xff] %vm1651_vm2, %v58_v49  ;;  %v1292_v54 = vor.u32 %v1439_v52, %v1291_v50  ;;  %v1296_v55 = vor.u32 %v1438_v51, %v1293_v53 }
  0x98   :  { %249 = vmatpush.bf16.msra.mxu0 %v1292_v54  ;;  %267 = vmatpush.bf16.msra.mxu1 %v1296_v55 }
  0x99   :  { %v46_v56 = vpop.permute.xlu0 %45  ;;  %v178_v38 = vpop.permute.xlu1 %177 }
  0x9a   :  { %v47_v57 = vrot.slane %v46_v56, 4 }
  0x9c   :  { %v49_v61 = vsel %vm2056_vm11, %v46_v56, %v47_v57  ;;  %v1437_v62 = vld [vmem:[#allocation3 + $0x24] sm:$0xf0]  ;;  %v1285_v0 = vld [vmem:[#allocation3 + $0x28] sm:$0xf0] }
  0x9d   :  { %51 = vst.msk [vmem:[#allocation3 + $0x8] sm:$0xff] %vm1651_vm2, %v49_v61  ;;  %v1284_v1 = vor.u32 %v1437_v62, %v1283_v60  ;;  %v1288_v2 = vor.u32 %v1436_v63, %v1285_v0  ;;  %v1275_v4 = vld [vmem:[#allocation3 + $0x10] sm:$0xf]  ;;  %v1434_v6 = vld [vmem:[#allocation3 + $0x14] sm:$0xf] }
  0x9e   :  { %v1276_v8 = vor.u32 %v1435_v3, %v1275_v4  ;;  %v1280_v9 = vor.u32 %v1434_v6, %v1277_v7 }
  0x9f   :  { %250 = vmatpush.bf16.msra.mxu0 %v1284_v1  ;;  %268 = vmatpush.bf16.msra.mxu1 %v1288_v2 }
  0xa1   :  { %v173_v26 = vpop.permute.xlu0 %172 }
  0xa3   :  { %251 = vmatpush.bf16.msra.mxu0 %v1276_v8  ;;  %269 = vmatpush.bf16.msra.mxu1 %v1280_v9 }
  0xa4   :  { %v1433_v12 = vld [vmem:[#allocation3 + $0x4] sm:$0xf0]  ;;  %v1269_v13 = vld [vmem:[#allocation3 + $0x8] sm:$0xf0] }
  0xa5   :  { %v1268_v14 = vor.u32 %v1433_v12, %v1267_v10  ;;  %v1272_v15 = vor.u32 %v1432_v11, %v1269_v13 }
  0xa7   :  { %252 = vmatpush.bf16.msra.mxu0 %v1268_v14  ;;  %270 = vmatpush.bf16.msra.mxu1 %v1272_v15 }
  0xaa   :  { %1305 = vmatmul.msk.bf16.vlgmr.msra.gmra.mxu0 %vm2055_vm3, %v1431_v5  ;;  %1307 = vmatmul.msk.bf16.vlgmr.msra.gmra.mxu1 %vm2055_vm3, %v1431_v5 }
  0xba   :  { %1306 = vmatmul.msk.bf16.gmra.mxu0 %vm2055_vm3, %v187_v18  ;;  %1308 = vmatmul.msk.bf16.gmra.mxu1 %vm2055_vm3, %v187_v18 }
 0x127   :  { %v254_v20 = vpop.f32.mrf.mxu0  ;;  %v272_v21 = vpop.f32.mrf.mxu1 }
 0x128   :  { %v255_v22 = vadd.f32 %v254_v20, %v168_v19  ;;  %v273_v23 = vadd.f32 %v272_v21, %v168_v19 }
 0x12a   :  { %v1309_v24 = vmul.f32 -1.442695, %v255_v22  ;;  %v1310_v25 = vmul.f32 -1.442695, %v273_v23 }
 0x12c   :  { %1492 = vpow2.f32 %v1309_v24 }
 0x12d   :  { %1494 = vpow2.f32 %v1310_v25 }
 0x12f   :  { %v256_v27 = vpop.f32.mrf.mxu0  ;;  %v274_v28 = vpop.f32.mrf.mxu1 }
 0x130   :  { %v257_v29 = vadd.f32 %v256_v27, %v173_v26  ;;  %v275_v30 = vadd.f32 %v274_v28, %v173_v26 }
 0x132   :  { %v1493_v31 = vpop.eup %1492  ;;  %v1311_v32 = vmul.f32 -1.442695, %v257_v29  ;;  %v1312_v36 = vmul.f32 -1.442695, %v275_v30 }
 0x133   :  { %v1495_v33 = vpop.eup %1494  ;;  %v299_v34 = vadd.f32 1.0, %v1493_v31 }
 0x134   :  { %v300_v37 = vadd.f32 1.0, %v1495_v33  ;;  %1496 = vpow2.f32 %v1311_v32 }
 0x135   :  { %1498 = vrcp.f32 %v299_v34  ;;  %v314_v54 = vand.u32 2147483647, %v299_v34  ;;  %v316_v55 = vand.u32 2147483648, %v299_v34  ;;  %vm310_vm15 = vweird.f32 %v299_v34 }
 0x136   :  { %1500 = vrcp.f32 %v300_v37  ;;  %v329_v57 = vand.u32 2147483647, %v300_v37  ;;  %v331_v61 = vand.u32 2147483648, %v300_v37  ;;  %vm325_vm1 = vweird.f32 %v300_v37 }
 0x137   :  { %1502 = vpow2.f32 %v1312_v36  ;;  %v259_v39 = vpop.f32.mrf.mxu0  ;;  %v277_v40 = vpop.f32.mrf.mxu1  ;;  %vm315_vm12 = vcmp.eq.f32.partialorder %v314_v54, 8.507059e+37  ;;  %v317_v2 = vor.u32 1.1754944e-38, %v316_v55 }
 0x138   :  { %v260_v41 = vadd.f32 %v259_v39, %v178_v38  ;;  %v278_v42 = vadd.f32 %v277_v40, %v178_v38  ;;  %vm330_vm3 = vcmp.eq.f32.partialorder %v329_v57, 8.507059e+37  ;;  %v332_v9 = vor.u32 1.1754944e-38, %v331_v61 }
 0x13a   :  { %v1497_v43 = vpop.eup %1496  ;;  %v1313_v44 = vmul.f32 -1.442695, %v260_v41  ;;  %v1314_v45 = vmul.f32 -1.442695, %v278_v42 }
 0x13b   :  { %v1499_v46 = vpop.eup %1498  ;;  %v1704_v47 = vadd.f32 1.0, %v1497_v43 }
 0x13c   :  { %v1501_v48 = vpop.eup %1500  ;;  %v306_v49 = vmul.f32 %v1499_v46, %v299_v34  ;;  %1504 = vpow2.f32 %v1313_v44  ;;  %vm311_vm13 = vweird.f32 %v1499_v46 }
 0x13d   :  { %v1503_v50 = vpop.eup %1502  ;;  %v321_v51 = vmul.f32 %v1501_v48, %v300_v37  ;;  %1506 = vrcp.f32 %v1704_v47  ;;  %vm326_vm14 = vweird.f32 %v1501_v48  ;;  %vm312_vm2 = vmor %vm310_vm15, %vm311_vm13  ;;  %v344_v5 = vand.u32 2147483647, %v1704_v47 }
 0x13e   :  { %v1709_v52 = vadd.f32 1.0, %v1503_v50  ;;  %v307_v53 = vsub.f32 1.0, %v306_v49  ;;  %1508 = vpow2.f32 %v1314_v45  ;;  %vm327_vm0 = vmor %vm325_vm1, %vm326_vm14  ;;  %v346_v18 = vand.u32 2147483648, %v1704_v47 }
 0x13f   :  { %v322_v56 = vsub.f32 1.0, %v321_v51  ;;  %v261_v58 = vpop.f32.mrf.mxu0  ;;  %v279_v59 = vpop.f32.mrf.mxu1 }
 0x140   :  { %1510 = vrcp.f32 %v1709_v52  ;;  %v308_v60 = vmul.f32 %v1499_v46, %v307_v53  ;;  %v359_v20 = vand.u32 2147483647, %v1709_v52  ;;  %v361_v21 = vand.u32 2147483648, %v1709_v52 }
 0x141   :  { %v323_v62 = vmul.f32 %v1501_v48, %v322_v56  ;;  %v347_v27 = vor.u32 1.1754944e-38, %v346_v18  ;;  %vm355_vm15 = vweird.f32 %v1709_v52 }
 0x142   :  { %v1505_v63 = vpop.eup %1504  ;;  %v309_v0 = vadd.f32 %v1499_v46, %v308_v60  ;;  %v362_v32 = vor.u32 1.1754944e-38, %v361_v21 }
 0x143   :  { %v1507_v1 = vpop.eup %1506  ;;  %v324_v3 = vadd.f32 %v1501_v48, %v323_v62  ;;  %v303_v4 = vadd.f32 1.0, %v1505_v63 }
 0x144   :  { %v1509_v6 = vpop.eup %1508  ;;  %v336_v7 = vmul.f32 %v1507_v1, %v1704_v47  ;;  %v313_v8 = vsel %vm312_vm2, %v1499_v46, %v309_v0  ;;  %vm341_vm13 = vweird.f32 %v1507_v1  ;;  %vm1732_vm2 = vcmp.eq.f32.partialorder %v359_v20, 8.507059e+37 }
 0x145   :  { %v318_v10 = vsel %vm315_vm12, %v317_v2, %v313_v8  ;;  %v328_v11 = vsel %vm327_vm0, %v1501_v48, %v324_v3  ;;  %1512 = vrcp.f32 %v303_v4  ;;  %v304_v12 = vadd.f32 1.0, %v1509_v6 }
 0x146   :  { %v1511_v13 = vpop.eup %1510  ;;  %v333_v14 = vsel %vm330_vm3, %v332_v9, %v328_v11  ;;  %v337_v15 = vsub.f32 1.0, %v336_v7  ;;  %vm340_vm0 = vweird.f32 %v1704_v47  ;;  %vm1721_vm3 = vcmp.eq.f32.partialorder %v344_v5, 8.507059e+37 }
 0x147   :  { %v351_v16 = vmul.f32 %v1511_v13, %v1709_v52  ;;  %v395_v17 = vpack.c.bf16 %v333_v14, %v318_v10  ;;  %1514 = vrcp.f32 %v304_v12  ;;  %vm1725_vm14 = vmor %vm340_vm0, %vm341_vm13  ;;  %vm356_vm1 = vweird.f32 %v1511_v13 }
 0x148   :  { %v338_v19 = vmul.f32 %v1507_v1, %v337_v15  ;;  %vm370_vm12 = vweird.f32 %v303_v4  ;;  %v374_v36 = vand.u32 2147483647, %v303_v4  ;;  %v376_v37 = vand.u32 2147483648, %v303_v4  ;;  %vm357_vm13 = vmor %vm355_vm15, %vm356_vm1 }
 0x149   :  { %405 = vrot.lane.b32.xlu2 %v395_v17, %s1580_s2  ;;  %v352_v22 = vsub.f32 1.0, %v351_v16  ;;  %vm385_vm11 = vweird.f32 %v304_v12  ;;  %v389_v42 = vand.u32 2147483647, %v304_v12  ;;  %v391_v43 = vand.u32 2147483648, %v304_v12 }
 0x14a   :  { %v339_v23 = vadd.f32 %v1507_v1, %v338_v19  ;;  %v377_v48 = vor.u32 1.1754944e-38, %v376_v37  ;;  %vm375_vm8 = vcmp.eq.f32.partialorder %v374_v36, 8.507059e+37  ;;  %vm421_vm1 = vcmask 1043712  }
 0x14b   :  { %v1513_v25 = vpop.eup %1512  ;;  %v353_v28 = vmul.f32 %v1511_v13, %v352_v22  ;;  %v392_v51 = vor.u32 1.1754944e-38, %v391_v43  ;;  %vm390_vm15 = vcmp.eq.f32.partialorder %v389_v42, 8.507059e+37  ;;  %v1883_v42 = vld [vmem:[%s2051_s3 + $0x4] sm:$0xff] }
 0x14c   :  { %v366_v29 = vmul.f32 %v1513_v25, %v303_v4  ;;  %v343_v30 = vsel %vm1725_vm14, %v1507_v1, %v339_v23  ;;  %vm371_vm0 = vweird.f32 %v1513_v25 }
 0x14d   :  { %v1515_v33 = vpop.eup %1514  ;;  %v354_v34 = vadd.f32 %v1511_v13, %v353_v28  ;;  %v348_v39 = vsel %vm1721_vm3, %v347_v27, %v343_v30  ;;  %vm372_vm7 = vmor %vm370_vm12, %vm371_vm0  ;;  %vm427_vm12 = vcmask 1044416   ;;  %vm414_vm0 = vcmask 261120  }
 0x14e   :  { %v381_v38 = vmul.f32 %v1515_v33, %v304_v12  ;;  %v367_v40 = vsub.f32 1.0, %v366_v29  ;;  %vm386_vm14 = vweird.f32 %v1515_v33 }
 0x14f   :  { %v358_v41 = vsel %vm357_vm13, %v1511_v13, %v354_v34  ;;  %vm387_vm3 = vmor %vm385_vm11, %vm386_vm14  ;;  %vm428_vm13 = vcmask 195588   ;;  %vm2073_vm11 = vcmask 588800   ;;  %vm2074_vm14 = vcmask 523264  }
 0x150   :  { %v363_v44 = vsel %vm1732_vm2, %v362_v32, %v358_v41  ;;  %v368_v45 = vmul.f32 %v1513_v25, %v367_v40  ;;  %v382_v46 = vsub.f32 1.0, %v381_v38  ;;  %vm422_vm2 = vcmask 982020  }
 0x151   :  { %v396_v47 = vpack.c.bf16 %v363_v44, %v348_v39  ;;  %vm1743_vm6 = vmor %vm422_vm2, %vm421_vm1 }
 0x152   :  { %v369_v49 = vadd.f32 %v1513_v25, %v368_v45  ;;  %v383_v50 = vmul.f32 %v1515_v33, %v382_v46  ;;  %v671_v46 = vld [vmem:[%s2051_s3] sm:$0xff]  ;;  %vm2077_vm2 = vmmov %vm2073_vm11 }
 0x153   :  { %407 = vrot.lane.b32.xlu1 %v396_v47, %s1580_s2 }
 0x154   :  { %v373_v52 = vsel %vm372_vm7, %v1513_v25, %v369_v49  ;;  %v384_v53 = vadd.f32 %v1515_v33, %v383_v50  ;;  %vm1747_vm7 = vmor %vm428_vm13, %vm427_vm12  ;;  %v968_v50 = vunpack.c.l.b16 %v1883_v42  ;;  %vm2078_vm12 = vcmask 654336  }
 0x155   :  { %v378_v54 = vsel %vm375_vm8, %v377_v48, %v373_v52  ;;  %vm941_vm8 = vcmask 130048   ;;  %vm2079_vm13 = vmmov %vm2078_vm12 }
 0x156   :  { %v388_v55 = vsel %vm387_vm3, %v1515_v33, %v384_v53  ;;  %vm916_vm3 = vcmask 195584  }
 0x157   :  { %v393_v56 = vsel %vm390_vm15, %v392_v51, %v388_v55  ;;  %v689_v51 = vunpack.c.h.b16 %v671_v46  ;;  %vm2075_vm15 = vcmask 982016  }
 0x158   :  { %v397_v57 = vpack.c.bf16 %v393_v56, %v378_v54  ;;  %vm2076_vm1 = vmmov %vm2075_vm15 }
 0x159   :  { %v691_v61 = vpack.c.b16 %v689_v51, %v689_v51 }
 0x15b   :  { %409 = vrot.lane.b32.xlu1 %v397_v57, %s1580_s2 }
 0x1a3   :  { %v406_v58 = vpop.permute.xlu2 %405 }
 0x1a4   :  { %v411_v60 = vrot.slane %v406_v58, 4 }
 0x1a6   :  { %v415_v62 = vsel %vm414_vm0, %v411_v60, %v406_v58  ;;  %v970_v58 = vpack.c.b16 %v968_v50, %v968_v50 }
 0x1a7   :  { %424 = vst.msk [vmem:[#allocation2] sm:$0xff] %vm1743_vm6, %v415_v62  ;;  %v1144_v62 = vld [vmem:[%s2051_s3 + $0x8] sm:$0xff] }
 0x1a8   :  { %430 = vst.msk [vmem:[#allocation2 + $0x4] sm:$0xff] %vm1747_vm7, %v1579_v35 }
 0x1ae   :  { %v433_v63 = vld [vmem:[#allocation2] sm:$0xf] }
 0x1af   :  { %v1757_v0 = vld [vmem:[#allocation2] sm:$0xff]  ;;  %436 = vst [vmem:[#allocation3] sm:$0xf] %v433_v63 }
 0x1b0   :  { %653 = vrot.lane.b32.xlu1 %v1757_v0, %s1571_s27  ;;  %629 = vrot.lane.b32.xlu2 %v1757_v0, %s1569_s23  ;;  %v1096_v4 = vld [vmem:[#allocation2 + $0x4] sm:$0xff] }
 0x1b1   :  { %517 = vrot.lane.b32.xlu0 %v1757_v0, %s1574_s12 }
 0x1b6   :  { %v1855_v18 = vld [vmem:[#allocation3] sm:$0xf] }
 0x1b8   :  { %907 = vrot.lane.b32.xlu2 %v1757_v0, %s1581_s22  ;;  %469 = vrot.lane.b32.xlu1 %v1757_v0, %s1576_s14 }
 0x1b9   :  { %493 = vrot.lane.b32.xlu0 %v1757_v0, %s1577_s15 }
 0x1c0   :  { %557 = vrot.lane.b32.xlu2 %v1757_v0, %s1575_s13  ;;  %605 = vrot.lane.b32.xlu1 %v1757_v0, %s1573_s11 }
 0x1c1   :  { %932 = vrot.lane.b32.xlu0 %v1757_v0, %s1582_s24 }
 0x1c5   :  { %v408_v1 = vpop.permute.xlu1 %407 }
 0x1c6   :  { %v412_v2 = vrot.slane %v408_v1, 4 }
 0x1c8   :  { %v416_v3 = vsel %vm414_vm0, %v412_v2, %v408_v1  ;;  %883 = vrot.lane.b32.xlu1 %v1757_v0, %s1580_s2 }
 0x1c9   :  { %425 = vst.msk [vmem:[#allocation2 + $0xc] sm:$0xff] %vm1743_vm6, %v416_v3  ;;  %445 = vrot.lane.b32.xlu0 %v1757_v0, %s1578_s16 }
 0x1ca   :  { %431 = vst.msk [vmem:[#allocation2 + $0x10] sm:$0xff] %vm1747_vm7, %v1579_v35 }
 0x1cd   :  { %v410_v6 = vpop.permute.xlu1 %409 }
 0x1ce   :  { %v413_v7 = vrot.slane %v410_v6, 4 }
 0x1d0   :  { %1102 = vrot.lane.b32.xlu1 %v1096_v4, %s1576_s14  ;;  %v417_v8 = vsel %vm414_vm0, %v413_v7, %v410_v6  ;;  %v434_v9 = vld [vmem:[#allocation2 + $0xc] sm:$0xf]  ;;  %v1161_v6 = vunpack.c.l.b16 %v1144_v62 }
 0x1d1   :  { %v1789_v10 = vld [vmem:[#allocation2 + $0xc] sm:$0xff]  ;;  %1126 = vrot.lane.b32.xlu0 %v1096_v4, %s1577_s15  ;;  %426 = vst.msk [vmem:[#allocation2 + $0x18] sm:$0xff] %vm1743_vm6, %v417_v8  ;;  %vm2072_vm6 = vcmask 457728   ;;  %v688_v8 = vunpack.c.l.b16 %v671_v46 }
 0x1d2   :  { %655 = vrot.lane.b32.xlu2 %v1789_v10, %s1571_s27  ;;  %432 = vst.msk [vmem:[#allocation2 + $0x1c] sm:$0xff] %vm1747_vm7, %v1579_v35  ;;  %v1121_v35 = vld [vmem:[#allocation2 + $0x10] sm:$0xff]  ;;  %vm867_vm7 = vcmask 326656  }
 0x1d3   :  { %437 = vst [vmem:[#allocation3 + $0x8] sm:$0xf] %v434_v9 }
 0x1d8   :  { %519 = vrot.lane.b32.xlu1 %v1789_v10, %s1574_s12  ;;  %v435_v11 = vld [vmem:[#allocation2 + $0x18] sm:$0xf] }
 0x1d9   :  { %581 = vrot.lane.b32.xlu0 %v1757_v0, %s1572_s1  ;;  %438 = vst [vmem:[#allocation3 + $0x10] sm:$0xf] %v435_v11  ;;  %v1822_v12 = vld [vmem:[#allocation2 + $0x18] sm:$0xff] }
 0x1da   :  { %471 = vrot.lane.b32.xlu2 %v1789_v10, %s1576_s14  ;;  %v1122_v15 = vld [vmem:[#allocation2 + $0x1c] sm:$0xff] }
 0x1e0   :  { %934 = vrot.lane.b32.xlu1 %v1789_v10, %s1582_s24 }
 0x1e1   :  { %858 = vrot.lane.b32.xlu0 %v1757_v0, %s1583_s25 }
 0x1e2   :  { %447 = vrot.lane.b32.xlu2 %v1789_v10, %s1578_s16 }
 0x1e8   :  { %1128 = vrot.lane.b32.xlu1 %v1121_v35, %s1577_s15 }
 0x1e9   :  { %495 = vrot.lane.b32.xlu0 %v1789_v10, %s1577_s15 }
 0x1ea   :  { %607 = vrot.lane.b32.xlu2 %v1789_v10, %s1573_s11 }
 0x1f0   :  { %860 = vrot.lane.b32.xlu1 %v1789_v10, %s1583_s25 }
 0x1f1   :  { %631 = vrot.lane.b32.xlu0 %v1789_v10, %s1569_s23 }
 0x1f2   :  { %583 = vrot.lane.b32.xlu2 %v1789_v10, %s1572_s1 }
 0x1f8   :  { %497 = vrot.lane.b32.xlu1 %v1822_v12, %s1577_s15 }
 0x1f9   :  { %909 = vrot.lane.b32.xlu0 %v1789_v10, %s1581_s22 }
 0x1fa   :  { %885 = vrot.lane.b32.xlu2 %v1789_v10, %s1580_s2 }
 0x200   :  { %633 = vrot.lane.b32.xlu1 %v1822_v12, %s1569_s23  ;;  %s1584_s23 = smov 48  }
 0x201   :  { %1104 = vrot.lane.b32.xlu0 %v1121_v35, %s1576_s14 }
 0x202   :  { %521 = vrot.lane.b32.xlu2 %v1822_v12, %s1574_s12 }
 0x208   :  { %609 = vrot.lane.b32.xlu1 %v1822_v12, %s1573_s11 }
 0x209   :  { %559 = vrot.lane.b32.xlu0 %v1789_v10, %s1575_s13 }
 0x20a   :  { %657 = vrot.lane.b32.xlu2 %v1822_v12, %s1571_s27  ;;  %v630_v13 = vpop.permute.xlu2 %629 }
 0x20b   :  { %v635_v33 = vrot.slane %v630_v13, 4 }
 0x20d   :  { %v638_v44 = vsel %vm2074_vm14, %v630_v13, %v635_v33 }
 0x210   :  { %911 = vrot.lane.b32.xlu1 %v1822_v12, %s1581_s22 }
 0x211   :  { %936 = vrot.lane.b32.xlu0 %v1822_v12, %s1582_s24 }
 0x212   :  { %473 = vrot.lane.b32.xlu2 %v1822_v12, %s1576_s14  ;;  %v1847_v14 = vpop.permute.xlu2 %907 }
 0x213   :  { %v913_v55 = vrot.slane %v1847_v14, 4 }
 0x215   :  { %v917_v3 = vsel %vm916_vm3, %v1847_v14, %v913_v55  ;;  %v1163_v14 = vpack.c.b16 %v1161_v6, %v1161_v6 }
 0x218   :  { %887 = vrot.lane.b32.xlu1 %v1822_v12, %s1580_s2 }
 0x219   :  { %449 = vrot.lane.b32.xlu0 %v1822_v12, %s1578_s16 }
 0x21a   :  { %1130 = vrot.lane.b32.xlu2 %v1122_v15, %s1577_s15  ;;  %v558_v5 = vpop.permute.xlu2 %557 }
 0x21b   :  { %v563_v16 = vrot.slane %v558_v5, 4 }
 0x21d   :  { %v566_v17 = vsel %vm84_vm9, %v558_v5, %v563_v16 }
 0x21e   :  { %572 = vst [vmem:[#allocation3] sm:$0xf] %v566_v17  ;;  %v690_v17 = vpack.c.b16 %v688_v8, %v688_v8 }
 0x220   :  { %1106 = vrot.lane.b32.xlu1 %v1122_v15, %s1576_s14 }
 0x221   :  { %585 = vrot.lane.b32.xlu0 %v1822_v12, %s1572_s1 }
 0x222   :  { %561 = vrot.lane.b32.xlu2 %v1822_v12, %s1575_s13  ;;  %v654_v19 = vpop.permute.xlu1 %653  ;;  %s1251_s13 = sshll.u32 %s2053_s5, 4  ;;  %s1252_s13 = int_to_ptr.hbm [resolvable:$true] %s1251_s13 }
 0x223   :  { %v518_v20 = vpop.permute.xlu0 %517  ;;  %v659_v24 = vrot.slane %v654_v19, 4 }
 0x224   :  { %v523_v21 = vrot.slane %v518_v20, 4 }
 0x225   :  { %v662_v32 = vsel %vm2072_vm6, %v654_v19, %v659_v24 }
 0x226   :  { %v526_v22 = vsel %vm75_vm4, %v518_v20, %v523_v21 }
 0x227   :  { %532 = vst [vmem:[#allocation3 + $0x60] sm:$0xf] %v526_v22 }
 0x228   :  { %1078 = vrot.lane.b32.xlu1 %v1096_v4, %s1578_s16  ;;  %v1162_v4 = vunpack.c.h.b16 %v1144_v62 }
 0x229   :  { %1082 = vrot.lane.b32.xlu0 %v1122_v15, %s1578_s16 }
 0x22a   :  { %1080 = vrot.lane.b32.xlu2 %v1121_v35, %s1578_s16  ;;  %v470_v23 = vpop.permute.xlu1 %469  ;;  %v1164_v13 = vpack.c.b16 %v1162_v4, %v1162_v4 }
 0x22b   :  { %v494_v25 = vpop.permute.xlu0 %493  ;;  %v475_v26 = vrot.slane %v470_v23, 4 }
 0x22c   :  { %v1866_v27 = vpop.permute.xlu2 %655  ;;  %v499_v28 = vrot.slane %v494_v25, 4 }
 0x22d   :  { %v478_v29 = vsel %vm57_vm10, %v470_v23, %v475_v26  ;;  %v969_v23 = vunpack.c.h.b16 %v1883_v42 }
 0x22e   :  { %v502_v30 = vsel %vm66_vm5, %v494_v25, %v499_v28  ;;  %484 = vst [vmem:[#allocation3 + $0x30] sm:$0xf] %v478_v29  ;;  %v1870_v31 = vld [vmem:[#allocation3 + $0x60] sm:$0xf] }
 0x22f   :  { %508 = vst [vmem:[#allocation3 + $0x48] sm:$0xf] %v502_v30  ;;  %v971_v33 = vpack.c.b16 %v969_v23, %v969_v23 }
 0x230   :  { %835 = vrot.lane.b32.xlu1 %v1789_v10, %s1584_s23  ;;  %668 = vst [vmem:[#allocation3 + $0x60] sm:$0xf] %v662_v32 }
 0x231   :  { %833 = vrot.lane.b32.xlu0 %v1757_v0, %s1584_s23 }
 0x232   :  { %862 = vrot.lane.b32.xlu2 %v1822_v12, %s1583_s25  ;;  %v606_v34 = vpop.permute.xlu1 %605 }
 0x233   :  { %v933_v36 = vpop.permute.xlu0 %932  ;;  %v611_v37 = vrot.slane %v606_v34, 4 }
 0x234   :  { %v472_v38 = vpop.permute.xlu2 %471  ;;  %v938_v39 = vrot.slane %v933_v36, 4 }
 0x235   :  { %v476_v40 = vrot.slane %v472_v38, 4  ;;  %v614_v41 = vsel %vm2073_vm11, %v606_v34, %v611_v37  ;;  %v1885_v43 = vld [vmem:[#allocation3 + $0x30] sm:$0xf]  ;;  %vm2080_vm11 = vmmov %vm2074_vm14  ;;  %vm2082_vm14 = vcmask 1043456  }
 0x236   :  { %v942_v45 = vsel %vm941_vm8, %v933_v36, %v938_v39  ;;  %v1892_v47 = vld [vmem:[#allocation3 + $0x44] sm:$0xf0]  ;;  %620 = vst [vmem:[#allocation3 + $0x30] sm:$0xf] %v614_v41 }
 0x237   :  { %v479_v48 = vsel %vm57_vm10, %v472_v38, %v476_v40  ;;  %v1895_v49 = vld [vmem:[#allocation3 + $0x60] sm:$0xf]  ;;  %644 = vst [vmem:[#allocation3 + $0x48] sm:$0xf] %v638_v44  ;;  %v660_v38 = vrot.slane %v1866_v27, 4 }
 0x238   :  { %485 = vst [vmem:[#allocation3 + $0x38] sm:$0xf] %v479_v48  ;;  %1050 = vrot.lane.b32.xlu1 %v1789_v10, %s1585_s29 }
 0x239   :  { %1048 = vrot.lane.b32.xlu0 %v1757_v0, %s1585_s29  ;;  %948 = vst [vmem:[#allocation3 + $0x60] sm:$0xf] %v942_v45  ;;  %v663_v44 = vsel %vm2072_vm6, %v1866_v27, %v660_v38 }
 0x23a   :  { %837 = vrot.lane.b32.xlu2 %v1822_v12, %s1584_s23  ;;  %v884_v52 = vpop.permute.xlu1 %883 }
 0x23b   :  { %v889_v53 = vrot.slane %v884_v52, 4  ;;  %v446_v54 = vpop.permute.xlu0 %445 }
 0x23c   :  { %v448_v56 = vpop.permute.xlu2 %447  ;;  %v451_v57 = vrot.slane %v446_v54, 4 }
 0x23d   :  { %v452_v59 = vrot.slane %v448_v56, 4  ;;  %v892_v60 = vsel %vm414_vm0, %v884_v52, %v889_v53  ;;  %v1909_v63 = vld [vmem:[#allocation3 + $0x30] sm:$0xf]  ;;  %v1235_v52 = vld [vmem:[%s2052_s4] sm:$0xff] }
 0x23e   :  { %v454_v0 = vsel %vm2075_vm15, %v446_v54, %v451_v57  ;;  %v1912_v1 = vld [vmem:[#allocation3 + $0x44] sm:$0xf0]  ;;  %898 = vst [vmem:[#allocation3 + $0x30] sm:$0xf] %v892_v60  ;;  %vm2083_vm15 = vmmov %vm2082_vm14 }
 0x23f   :  { %v455_v2 = vsel %vm2076_vm1, %v448_v56, %v452_v59  ;;  %460 = vst [vmem:[#allocation3 + $0x18] sm:$0xf] %v454_v0  ;;  %v1926_v21 = vld [vmem:[#allocation3 + $0x34] sm:$0xf0]  ;;  %vm2084_vm1 = vmmov %vm2080_vm11 }
 0x240   :  { %461 = vst [vmem:[#allocation3 + $0x20] sm:$0xf] %v455_v2  ;;  %972 = vrot.lane.b32.xlu1 %v970_v58, %s1582_s24  ;;  %v1923_v19 = vld [vmem:[#allocation3 + $0x60] sm:$0xf] }
 0x241   :  { %694 = vrot.lane.b32.xlu0 %v691_v61, %s1585_s29  ;;  %923 = vst [vmem:[#allocation3 + $0x48] sm:$0xf] %v917_v3 }
 0x242   :  { %1052 = vrot.lane.b32.xlu2 %v1822_v12, %s1585_s29  ;;  %v1103_v7 = vpop.permute.xlu1 %1102 }
 0x243   :  { %v1108_v9 = vrot.slane %v1103_v7, 4  ;;  %v1127_v10 = vpop.permute.xlu0 %1126 }
 0x244   :  { %v608_v11 = vpop.permute.xlu2 %607  ;;  %v1132_v35 = vrot.slane %v1127_v10, 4 }
 0x245   :  { %v612_v15 = vrot.slane %v608_v11, 4  ;;  %v1111_v5 = vsel %vm57_vm10, %v1103_v7, %v1108_v9 }
 0x246   :  { %v1135_v16 = vsel %vm66_vm5, %v1127_v10, %v1132_v35  ;;  %v1936_v34 = vld [vmem:[#allocation3 + $0x14] sm:$0xf0] }
 0x247   :  { %v615_v20 = vsel %vm2077_vm2, %v608_v11, %v612_v15  ;;  %1141 = vst [vmem:[#allocation3 + $0x60] sm:$0xf] %v1135_v16  ;;  %v1939_v37 = vld [vmem:[#allocation3 + $0x20] sm:$0xf] }
 0x248   :  { %1167 = vrot.lane.b32.xlu1 %v1164_v13, %s1581_s22  ;;  %621 = vst [vmem:[#allocation3 + $0x38] sm:$0xf] %v615_v20  ;;  %v1929_v12 = vld [vmem:[#allocation3 + $0x44] sm:$0xf0] }
 0x249   :  { %1165 = vrot.lane.b32.xlu0 %v1163_v14, %s1581_s22  ;;  %1117 = vst [vmem:[#allocation3 + $0x48] sm:$0xf] %v1111_v5 }
 0x24a   :  { %692 = vrot.lane.b32.xlu2 %v690_v17, %s1585_s29  ;;  %v520_v22 = vpop.permute.xlu1 %519 }
 0x24b   :  { %v524_v24 = vrot.slane %v520_v22, 4  ;;  %v582_v25 = vpop.permute.xlu0 %581 }
 0x24c   :  { %v584_v26 = vpop.permute.xlu2 %583  ;;  %v587_v28 = vrot.slane %v582_v25, 4 }
 0x24d   :  { %v588_v29 = vrot.slane %v584_v26, 4  ;;  %v527_v30 = vsel %vm75_vm4, %v520_v22, %v524_v24 }
 0x24e   :  { %533 = vst [vmem:[#allocation3 + $0x68] sm:$0xf] %v527_v30  ;;  %v590_v32 = vsel %vm2078_vm12, %v582_v25, %v587_v28 }
 0x24f   :  { %v591_v36 = vsel %vm2079_vm13, %v584_v26, %v588_v29  ;;  %596 = vst [vmem:[#allocation3 + $0x18] sm:$0xf] %v590_v32  ;;  %v1952_v53 = vld [vmem:[#allocation3 + $0x34] sm:$0xf0]  ;;  %vm2087_vm13 = vmmov %vm2082_vm14 }
 0x250   :  { %597 = vst [vmem:[#allocation3 + $0x20] sm:$0xf] %v591_v36 }
 0x252   :  { %974 = vrot.lane.b32.xlu2 %v971_v33, %s1582_s24  ;;  %v935_v39 = vpop.permute.xlu1 %934 }
 0x253   :  { %v859_v40 = vpop.permute.xlu0 %858  ;;  %v939_v54 = vrot.slane %v935_v39, 4 }
 0x254   :  { %v886_v41 = vpop.permute.xlu2 %885  ;;  %v864_v42 = vrot.slane %v859_v40, 4 }
 0x255   :  { %v890_v45 = vrot.slane %v886_v41, 4  ;;  %v1448_v46 = vld [vmem:[#allocation3 + $0x64] sm:$0xf0]  ;;  %v943_v58 = vsel %vm941_vm8, %v935_v39, %v939_v54 }
 0x256   :  { %v868_v48 = vsel %vm867_vm7, %v859_v40, %v864_v42  ;;  %669 = vst [vmem:[#allocation3 + $0x68] sm:$0xf] %v663_v44  ;;  %v1946_v50 = vld [vmem:[#allocation3 + $0x14] sm:$0xf0]  ;;  %v1371_v36 = vor.u32 %v1448_v46, %v1870_v31 }
 0x257   :  { %v893_v51 = vsel %vm414_vm0, %v886_v41, %v890_v45  ;;  %874 = vst [vmem:[#allocation3 + $0x18] sm:$0xf] %v868_v48  ;;  %v1965_v16 = vld [vmem:[#allocation3 + $0x20] sm:$0xf] }
 0x258   :  { %899 = vst [vmem:[#allocation3 + $0x38] sm:$0xf] %v893_v51 }
 0x25a   :  { %1238 = vperm.xlu2 %1490, %v1235_v52   ;;  %v1129_v27 = vpop.permute.xlu1 %1128 }
 0x25b   :  { %v496_v55 = vpop.permute.xlu0 %495  ;;  %v1133_v0 = vrot.slane %v1129_v27, 4 }
 0x25c   :  { %v522_v56 = vpop.permute.xlu2 %521  ;;  %v500_v57 = vrot.slane %v496_v55, 4 }
 0x25d   :  { %v525_v59 = vrot.slane %v522_v56, 4  ;;  %v1955_v60 = vld [vmem:[#allocation3 + $0x64] sm:$0xf0]  ;;  %v1136_v8 = vsel %vm66_vm5, %v1129_v27, %v1133_v0 }
 0x25e   :  { %v503_v61 = vsel %vm66_vm5, %v496_v55, %v500_v57  ;;  %949 = vst [vmem:[#allocation3 + $0x68] sm:$0xf] %v943_v58  ;;  %v1342_v55 = vor.u32 %v1955_v60, %v1895_v49  ;;  %v1359_v60 = vor.u32 %v1926_v21, %v1885_v43 }
 0x25f   :  { %v528_v62 = vsel %vm75_vm4, %v522_v56, %v525_v59  ;;  %509 = vst [vmem:[#allocation3 + $0x50] sm:$0xf] %v503_v61  ;;  %vm2081_vm4 = vmmov %vm2072_vm6  ;;  %vm842_vm6 = vcmask 392192  }
 0x260   :  { %534 = vst [vmem:[#allocation3 + $0x70] sm:$0xf] %v528_v62 }
 0x262   :  { %v861_v2 = vpop.permute.xlu1 %860 }
 0x263   :  { %v865_v3 = vrot.slane %v861_v2, 4  ;;  %v632_v4 = vpop.permute.xlu0 %631 }
 0x264   :  { %v658_v6 = vpop.permute.xlu2 %657  ;;  %v636_v7 = vrot.slane %v632_v4, 4 }
 0x265   :  { %v661_v9 = vrot.slane %v658_v6, 4  ;;  %v1960_v10 = vld [vmem:[#allocation3 + $0x64] sm:$0xf0]  ;;  %v869_v11 = vsel %vm867_vm7, %v861_v2, %v865_v3 }
 0x266   :  { %v639_v35 = vsel %vm2080_vm11, %v632_v4, %v636_v7  ;;  %v1366_v13 = vld [vmem:[#allocation3 + $0x50] sm:$0xf]  ;;  %1142 = vst [vmem:[#allocation3 + $0x68] sm:$0xf] %v1136_v8  ;;  %v1986_v7 = vld [vmem:[#allocation3 + $0x4] sm:$0xf0] }
 0x267   :  { %v550_v15 = vld [vmem:[#allocation3 + $0x70] sm:$0xf]  ;;  %v664_v14 = vsel %vm2081_vm4, %v658_v6, %v661_v9  ;;  %645 = vst [vmem:[#allocation3 + $0x50] sm:$0xf] %v639_v35  ;;  %v1991_v9 = vld [vmem:[#allocation3 + $0x14] sm:$0xf0] }
 0x268   :  { %670 = vst [vmem:[#allocation3 + $0x70] sm:$0xf] %v664_v14  ;;  %v792_v5 = vunpack.c.l.b16 %v550_v15  ;;  %v1989_v8 = vld [vmem:[#allocation3 + $0x10] sm:$0xf] }
 0x269   :  { %875 = vst [vmem:[#allocation3 + $0x20] sm:$0xf] %v869_v11  ;;  %v1066_v11 = vld [vmem:[#allocation2 + $0x4] sm:$0xf] }
 0x26a   :  { %v498_v17 = vpop.permute.xlu1 %497  ;;  %v800_v20 = vpack.c.b16 %v792_v5, %v792_v5  ;;  %1069 = vst [vmem:[#allocation3 + $0x18] sm:$0xf] %v1066_v11 }
 0x26b   :  { %v501_v22 = vrot.slane %v498_v17, 4  ;;  %v910_v23 = vpop.permute.xlu0 %909 }
 0x26c   :  { %v474_v24 = vpop.permute.xlu2 %473  ;;  %v914_v25 = vrot.slane %v910_v23, 4  ;;  %v812_v26 = vsel %vm2082_vm14, %v800_v20, 0 }
 0x26d   :  { %v477_v28 = vrot.slane %v474_v24, 4  ;;  %v504_v29 = vsel %vm66_vm5, %v498_v17, %v501_v22  ;;  %814 = vmatpush.bf16.msra.mxu3 %v812_v26  ;;  %v1067_v26 = vld [vmem:[#allocation2 + $0x10] sm:$0xf] }
 0x26e   :  { %510 = vst [vmem:[#allocation3 + $0x58] sm:$0xf] %v504_v29  ;;  %v918_v30 = vsel %vm916_vm3, %v910_v23, %v914_v25  ;;  %v1337_v32 = vld [vmem:[#allocation3 + $0x50] sm:$0xf]  ;;  %v1330_v29 = vor.u32 %v1952_v53, %v1909_v63 }
 0x26f   :  { %v480_v33 = vsel %vm57_vm10, %v474_v24, %v477_v28  ;;  %v686_v38 = vld [vmem:[#allocation3 + $0x70] sm:$0xf]  ;;  %924 = vst [vmem:[#allocation3 + $0x50] sm:$0xf] %v918_v30  ;;  %v1997_v24 = vld [vmem:[#allocation3 + $0x34] sm:$0xf0] }
 0x270   :  { %486 = vst [vmem:[#allocation3 + $0x40] sm:$0xf] %v480_v33  ;;  %v727_v39 = vunpack.c.l.b16 %v686_v38  ;;  %v1999_v25 = vld [vmem:[#allocation3 + $0x20] sm:$0xf] }
 0x271   :  { %815 = vmatpush.bf16.msra.mxu3 %v1371_v36  ;;  %1070 = vst [vmem:[#allocation3 + $0x20] sm:$0xf] %v1067_v26 }
 0x272   :  { %v634_v40 = vpop.permute.xlu1 %633  ;;  %v735_v41 = vpack.c.b16 %v727_v39, %v727_v39 }
 0x273   :  { %v637_v42 = vrot.slane %v634_v40, 4  ;;  %v1105_v44 = vpop.permute.xlu0 %1104 }
 0x274   :  { %v1972_v45 = vpop.permute.xlu2 %1130  ;;  %v1109_v48 = vrot.slane %v1105_v44, 4  ;;  %v748_v51 = vsel %vm2083_vm15, %v735_v41, 0 }
 0x275   :  { %v640_v52 = vsel %vm2084_vm1, %v634_v40, %v637_v42  ;;  %750 = vmatpush.bf16.msra.mxu2 %v748_v51  ;;  %v1447_v54 = vld [vmem:[#allocation3 + $0x54] sm:$0xf0]  ;;  %v1134_v30 = vrot.slane %v1972_v45, 4 }
 0x276   :  { %v1112_v31 = vsel %vm57_vm10, %v1105_v44, %v1109_v48  ;;  %646 = vst [vmem:[#allocation3 + $0x58] sm:$0xf] %v640_v52  ;;  %v1367_v46 = vor.u32 %v1447_v54, %v1366_v13  ;;  %v1977_v27 = vld [vmem:[#allocation3 + $0x50] sm:$0xf] }
 0x277   :  { %v1362_v56 = vld [vmem:[#allocation3 + $0x40] sm:$0xf]  ;;  %1118 = vst [vmem:[#allocation3 + $0x50] sm:$0xf] %v1112_v31  ;;  %v1137_v41 = vsel %vm66_vm5, %v1972_v45, %v1134_v30  ;;  %v1400_v45 = vor.u32 %v1960_v10, %v1923_v19  ;;  %v1351_v10 = vor.u32 %v1936_v34, %v1989_v8  ;;  %vm696_vm5 = vcmask 64512  }
 0x278   :  { %816 = vmatpush.bf16.msra.mxu3 %v1367_v46  ;;  %v1363_v58 = vor.u32 %v1892_v47, %v1362_v56 }
 0x279   :  { %751 = vmatpush.bf16.msra.mxu2 %v1342_v55 }
 0x27a   :  { %v610_v57 = vpop.permute.xlu1 %609 }
 0x27b   :  { %v613_v59 = vrot.slane %v610_v57, 4  ;;  %v560_v61 = vpop.permute.xlu0 %559 }
 0x27c   :  { %v562_v62 = vpop.permute.xlu2 %561  ;;  %v564_v0 = vrot.slane %v560_v61, 4  ;;  %817 = vmatpush.bf16.msra.mxu3 %v1363_v58 }
 0x27d   :  { %v565_v2 = vrot.slane %v562_v62, 4  ;;  %v616_v3 = vsel %vm2077_vm2, %v610_v57, %v613_v59  ;;  %v1454_v4 = vld [vmem:[#allocation3 + $0x54] sm:$0xf0] }
 0x27e   :  { %v567_v6 = vsel %vm84_vm9, %v560_v61, %v564_v0  ;;  %622 = vst [vmem:[#allocation3 + $0x40] sm:$0xf] %v616_v3  ;;  %v1338_v49 = vor.u32 %v1454_v4, %v1337_v32 }
 0x27f   :  { %v568_v47 = vsel %vm84_vm9, %v562_v62, %v565_v2  ;;  %573 = vst [vmem:[#allocation3 + $0x8] sm:$0xf] %v567_v6  ;;  %vm2085_vm9 = vcmask 982016  }
 0x280   :  { %752 = vmatpush.bf16.msra.mxu2 %v1338_v49  ;;  %818 = vmatpush.bf16.msra.mxu3 %v1359_v60  ;;  %574 = vst [vmem:[#allocation3 + $0x10] sm:$0xf] %v568_v47  ;;  %vm2086_vm12 = vmmov %vm2085_vm9 }
 0x281   :  { %vm2090_vm11 = vmmov %vm2085_vm9 }
 0x282   :  { %v912_v35 = vpop.permute.xlu1 %911  ;;  %vm2091_vm4 = vmmov %vm2085_vm9 }
 0x283   :  { %v915_v13 = vrot.slane %v912_v35, 4  ;;  %v937_v15 = vpop.permute.xlu0 %936  ;;  %vm2093_vm14 = vmmov %vm2091_vm4 }
 0x284   :  { %v1081_v14 = vpop.permute.xlu2 %1080  ;;  %v940_v5 = vrot.slane %v937_v15, 4  ;;  %vm2094_vm15 = vmmov %vm2091_vm4 }
 0x285   :  { %v1085_v43 = vrot.slane %v1081_v14, 4  ;;  %v919_v21 = vsel %vm916_vm3, %v912_v35, %v915_v13  ;;  %v1333_v17 = vld [vmem:[#allocation3 + $0x40] sm:$0xf]  ;;  %v1469_v35 = vld [vmem:[#allocation3 + $0x64] sm:$0xf0]  ;;  %vm2095_vm1 = vmmov %vm2091_vm4 }
 0x286   :  { %925 = vst [vmem:[#allocation3 + $0x58] sm:$0xf] %v919_v21  ;;  %v944_v20 = vsel %vm941_vm8, %v937_v15, %v940_v5  ;;  %v1334_v22 = vor.u32 %v1912_v1, %v1333_v17 }
 0x287   :  { %v1088_v23 = vsel %vm2085_vm9, %v1081_v14, %v1085_v43  ;;  %950 = vst [vmem:[#allocation3 + $0x70] sm:$0xf] %v944_v20  ;;  %v1321_v62 = vld [vmem:[#allocation3 + $0x10] sm:$0xf]  ;;  %v1428_v43 = vld [vmem:[#allocation3 + $0x60] sm:$0xf] }
 0x288   :  { %753 = vmatpush.bf16.msra.mxu2 %v1334_v22  ;;  %1094 = vst [vmem:[#allocation3 + $0x38] sm:$0xf] %v1088_v23  ;;  %v1429_v17 = vor.u32 %v1469_v35, %v1428_v43  ;;  %v1347_v23 = vor.u32 %v1986_v7, %v1855_v18  ;;  %v1449_v18 = vld [vmem:[#allocation3 + $0x4] sm:$0xf0] }
 0x28a   :  { %v888_v28 = vpop.permute.xlu1 %887 }
 0x28b   :  { %v891_v32 = vrot.slane %v888_v28, 4  ;;  %v450_v33 = vpop.permute.xlu0 %449 }
 0x28c   :  { %v863_v1 = vpop.permute.xlu2 %862  ;;  %v453_v36 = vrot.slane %v450_v33, 4  ;;  %754 = vmatpush.bf16.msra.mxu2 %v1330_v29  ;;  %v1424_v29 = vld [vmem:[#allocation3 + $0x50] sm:$0xf] }
 0x28d   :  { %v894_v38 = vsel %vm414_vm0, %v888_v28, %v891_v32  ;;  %v1461_v55 = vld [vmem:[#allocation3 + $0x54] sm:$0xf0]  ;;  %vm2088_vm0 = vcmask 654336   ;;  %v866_v6 = vrot.slane %v863_v1, 4 }
 0x28e   :  { %900 = vst [vmem:[#allocation3 + $0x40] sm:$0xf] %v894_v38  ;;  %v456_v39 = vsel %vm2086_vm12, %v450_v33, %v453_v36  ;;  %v966_v40 = vld [vmem:[#allocation3 + $0x70] sm:$0xf]  ;;  %v1396_v3 = vor.u32 %v1461_v55, %v1977_v27  ;;  %v1317_v38 = vld [vmem:[#allocation3] sm:$0xf] }
 0x28f   :  { %462 = vst [vmem:[#allocation3 + $0x28] sm:$0xf] %v456_v39  ;;  %v1006_v42 = vunpack.c.l.b16 %v966_v40  ;;  %v1387_v27 = vld [vmem:[#allocation3 + $0x30] sm:$0xf]  ;;  %v870_v8 = vsel %vm867_vm7, %v863_v1, %v866_v6  ;;  %v535_v1 = vld [vmem:[%s2051_s3] sm:$0xf]  ;;  %vm2092_vm7 = vmmov %vm2091_vm4 }
 0x290   :  { %1143 = vst [vmem:[#allocation3 + $0x70] sm:$0xf] %v1137_v41  ;;  %v1388_v28 = vor.u32 %v1997_v24, %v1387_v27  ;;  %v1068_v39 = vld [vmem:[#allocation2 + $0x1c] sm:$0xf]  ;;  %v1467_v41 = vld [vmem:[#allocation3 + $0x44] sm:$0xf0] }
 0x291   :  { %v1014_v63 = vpack.c.b16 %v1006_v42, %v1006_v42  ;;  %s1586_s3 = smov [#allocation7]  }
 0x292   :  { %v1107_v53 = vpop.permute.xlu1 %1106  ;;  %s1249_s10 = sshll.u32 %s1586_s3, 4  ;;  %s1250_s10 = int_to_ptr.vmem [resolvable:$true] %s1249_s10 }
 0x293   :  { %v1110_v44 = vrot.slane %v1107_v53, 4  ;;  %v586_v48 = vpop.permute.xlu0 %585  ;;  %v1026_v51 = vsel %vm2087_vm13, %v1014_v63, 0 }
 0x294   :  { %v838_v52 = vpop.permute.xlu2 %837  ;;  %v589_v54 = vrot.slane %v586_v48, 4  ;;  %1028 = vmatpush.bf16.msrb.mxu0 %v1026_v51 }
 0x295   :  { %v841_v31 = vrot.slane %v838_v52, 4  ;;  %v1113_v46 = vsel %vm57_vm10, %v1107_v53, %v1110_v44  ;;  %v1391_v60 = vld [vmem:[#allocation3 + $0x40] sm:$0xf]  ;;  %vm2089_vm10 = vmmov %vm2087_vm13 }
 0x296   :  { %v592_v56 = vsel %vm2088_vm0, %v586_v48, %v589_v54  ;;  %v1444_v57 = vld [vmem:[#allocation3 + $0x24] sm:$0xf0]  ;;  %1119 = vst [vmem:[#allocation3 + $0x58] sm:$0xf] %v1113_v46  ;;  %v1392_v5 = vor.u32 %v1929_v12, %v1391_v60 }
 0x297   :  { %v845_v58 = vsel %vm842_vm6, %v838_v52, %v841_v31  ;;  %598 = vst [vmem:[#allocation3 + $0x28] sm:$0xf] %v592_v56  ;;  %v1355_v59 = vor.u32 %v1444_v57, %v1939_v37  ;;  %v1159_v61 = vld [vmem:[#allocation3 + $0x70] sm:$0xf]  ;;  %v1466_v52 = vld [vmem:[#allocation3 + $0x34] sm:$0xf0] }
 0x298   :  { %1029 = vmatpush.bf16.msrb.mxu0 %v1400_v45  ;;  %v1199_v0 = vunpack.c.l.b16 %v1159_v61  ;;  %851 = vst [vmem:[#allocation3 + $0x10] sm:$0xf] %v845_v58  ;;  %v1412_v58 = vld [vmem:[#allocation3 + $0x20] sm:$0xf] }
 0x299   :  { %819 = vmatpush.bf16.msra.mxu3 %v1355_v59 }
 0x29a   :  { %v1079_v2 = vpop.permute.xlu1 %1078  ;;  %v1207_v4 = vpack.c.b16 %v1199_v0, %v1199_v0 }
 0x29b   :  { %v1084_v49 = vrot.slane %v1079_v2, 4  ;;  %v1083_v19 = vpop.permute.xlu0 %1082 }
 0x29c   :  { %v1053_v47 = vpop.permute.xlu2 %1052  ;;  %v1086_v37 = vrot.slane %v1083_v19, 4  ;;  %1030 = vmatpush.bf16.msrb.mxu0 %v1396_v3  ;;  %v1219_v11 = vsel %vm2089_vm10, %v1207_v4, 0  ;;  %v1464_v3 = vld [vmem:[#allocation3 + $0x14] sm:$0xf0] }
 0x29d   :  { %v1056_v13 = vrot.slane %v1053_v47, 4  ;;  %v1087_v15 = vsel %vm2090_vm11, %v1079_v2, %v1084_v49  ;;  %1221 = vmatpush.bf16.msrb.mxu1 %v1219_v11  ;;  %820 = vmatpush.bf16.msra.mxu3 %v1351_v10  ;;  %v1468_v26 = vld [vmem:[#allocation3 + $0x54] sm:$0xf0] }
 0x29e   :  { %v1089_v14 = vsel %vm2091_vm4, %v1083_v19, %v1086_v37  ;;  %v1451_v34 = vld [vmem:[#allocation3 + $0x24] sm:$0xf0]  ;;  %1093 = vst [vmem:[#allocation3 + $0x30] sm:$0xf] %v1087_v15  ;;  %v1425_v33 = vor.u32 %v1468_v26, %v1424_v29 }
 0x29f   :  { %v1059_v21 = vsel %vm696_vm5, %v1053_v47, %v1056_v13  ;;  %1095 = vst [vmem:[#allocation3 + $0x40] sm:$0xf] %v1089_v14  ;;  %v1326_v20 = vor.u32 %v1451_v34, %v1965_v16  ;;  %v1379_v22 = vld [vmem:[#allocation3 + $0x10] sm:$0xf]  ;;  %v1322_v16 = vor.u32 %v1946_v50, %v1321_v62  ;;  %v1318_v50 = vor.u32 %v1449_v18, %v1317_v38 }
 0x2a0   :  { %1031 = vmatpush.bf16.msrb.mxu0 %v1392_v5  ;;  %876 = vst [vmem:[#allocation3 + $0x28] sm:$0xf] %v870_v8  ;;  %v1380_v56 = vor.u32 %v1991_v9, %v1379_v22 }
 0x2a1   :  { %1222 = vmatpush.bf16.msrb.mxu1 %v1429_v17  ;;  %755 = vmatpush.bf16.msra.mxu2 %v1326_v20  ;;  %1065 = vst [vmem:[#allocation3 + $0x10] sm:$0xf] %v1059_v21 }
 0x2a2   :  { %821 = vmatpush.bf16.msra.mxu3 %v1347_v23  ;;  %v836_v12 = vpop.permute.xlu1 %835 }
 0x2a3   :  { %v840_v30 = vrot.slane %v836_v12, 4  ;;  %v834_v32 = vpop.permute.xlu0 %833 }
 0x2a4   :  { %v839_v36 = vrot.slane %v834_v32, 4  ;;  %1032 = vmatpush.bf16.msrb.mxu0 %v1388_v28  ;;  %v693_v53 = vpop.permute.xlu2 %692 }
 0x2a5   :  { %v844_v7 = vsel %vm842_vm6, %v836_v12, %v840_v30  ;;  %1223 = vmatpush.bf16.msrb.mxu1 %v1425_v33  ;;  %756 = vmatpush.bf16.msra.mxu2 %v1322_v16  ;;  %v1416_v48 = vld [vmem:[#allocation3 + $0x30] sm:$0xf] }
 0x2a6   :  { %v843_v24 = vsel %vm842_vm6, %v834_v32, %v839_v36  ;;  %850 = vst [vmem:[#allocation3 + $0x8] sm:$0xf] %v844_v7  ;;  %v1420_v40 = vld [vmem:[#allocation3 + $0x40] sm:$0xf]  ;;  %1372 = vmatmul.msk.bf16.vlgmr.msra.gmra.mxu3 %vm2092_vm7, %v535_v1  ;;  %v1417_v46 = vor.u32 %v1466_v52, %v1416_v48 }
 0x2a7   :  { %849 = vst [vmem:[#allocation3] sm:$0xf] %v843_v24  ;;  %v1458_v42 = vld [vmem:[#allocation3 + $0x24] sm:$0xf0]  ;;  %v1421_v63 = vor.u32 %v1467_v41, %v1420_v40 }
 0x2a8   :  { %v1384_v44 = vor.u32 %v1458_v42, %v1999_v25  ;;  %1071 = vst [vmem:[#allocation3 + $0x28] sm:$0xf] %v1068_v39  ;;  %v1408_v2 = vld [vmem:[#allocation3 + $0x10] sm:$0xf] }
 0x2a9   :  { %757 = vmatpush.bf16.msra.mxu2 %v1318_v50  ;;  %1224 = vmatpush.bf16.msrb.mxu1 %v1421_v63  ;;  %v1409_v10 = vor.u32 %v1464_v3, %v1408_v2 }
 0x2aa   :  { %1033 = vmatpush.bf16.msrb.mxu0 %v1384_v44  ;;  %v1051_v51 = vpop.permute.xlu1 %1050 }
 0x2ab   :  { %v1055_v54 = vrot.slane %v1051_v51, 4  ;;  %v1049_v31 = vpop.permute.xlu0 %1048 }
 0x2ac   :  { %v1054_v55 = vrot.slane %v1049_v31, 4  ;;  %v975_v4 = vpop.permute.xlu2 %974 }
 0x2ad   :  { %v1058_v45 = vsel %vm696_vm5, %v1051_v51, %v1055_v54  ;;  %1225 = vmatpush.bf16.msrb.mxu1 %v1417_v46  ;;  %v1456_v57 = vld [vmem:[#allocation3 + $0x4] sm:$0xf0] }
 0x2ae   :  { %v1057_v25 = vsel %vm696_vm5, %v1049_v31, %v1054_v55  ;;  %1034 = vmatpush.bf16.msrb.mxu0 %v1380_v56  ;;  %v1375_v59 = vld [vmem:[#allocation3] sm:$0xf]  ;;  %1064 = vst [vmem:[#allocation3 + $0x8] sm:$0xf] %v1058_v45 }
 0x2af   :  { %v1376_v61 = vor.u32 %v1456_v57, %v1375_v59  ;;  %1063 = vst [vmem:[#allocation3] sm:$0xf] %v1057_v25  ;;  %v1465_v62 = vld [vmem:[#allocation3 + $0x24] sm:$0xf0] }
 0x2b0   :  { %v1413_v0 = vor.u32 %v1465_v62, %v1412_v58 }
 0x2b2   :  { %1035 = vmatpush.bf16.msrb.mxu0 %v1376_v61  ;;  %1226 = vmatpush.bf16.msrb.mxu1 %v1413_v0  ;;  %v973_v9 = vpop.permute.xlu1 %972 }
 0x2b3   :  { %v976_v6 = vsel %vm941_vm8, %v973_v9, %v975_v4  ;;  %v695_v49 = vpop.permute.xlu0 %694 }
 0x2b4   :  { %v697_v19 = vsel %vm696_vm5, %v693_v53, %v695_v49  ;;  %v1239_v20 = vpop.permute.xlu2 %1238 }
 0x2b5   :  { %1343 = vmatmul.msk.bf16.vlgmr.msra.gmra.mxu2 %vm2093_vm14, %v697_v19  ;;  %1401 = vmatmul.msk.bf16.vlgmr.msrb.gmra.mxu0 %vm2094_vm15, %v976_v6  ;;  %v1463_v60 = vld [vmem:[#allocation3 + $0x4] sm:$0xf0] }
 0x2b6   :  { %1227 = vmatpush.bf16.msrb.mxu1 %v1409_v10  ;;  %v1404_v47 = vld [vmem:[#allocation3] sm:$0xf] }
 0x2b7   :  { %v1405_v37 = vor.u32 %v1463_v60, %v1404_v47 }
 0x2ba   :  { %1228 = vmatpush.bf16.msrb.mxu1 %v1405_v37  ;;  %v1168_v11 = vpop.permute.xlu1 %1167 }
 0x2bb   :  { %v1166_v35 = vpop.permute.xlu0 %1165 }
 0x2bc   :  { %v1169_v13 = vsel %vm916_vm3, %v1166_v35, %v1168_v11 }
 0x2bd   :  { %1430 = vmatmul.msk.bf16.vlgmr.msrb.gmra.mxu1 %vm2095_vm1, %v1169_v13 }
 0x329   :  { %v823_v15 = vpop.f32.mrf.mxu3 }
 0x331   :  { %v825_v27 = vpop.f32.mrf.mxu3 }
 0x332   :  { %v1037_v14 = vpop.f32.mrf.mxu0 }
 0x338   :  { %v759_v5 = vpop.f32.mrf.mxu2 }
 0x339   :  { %v824_v43 = vadd.f32 %v823_v15, %v759_v5 }
 0x33a   :  { %v1039_v34 = vpop.f32.mrf.mxu0  ;;  %v1230_v8 = vpop.f32.mrf.mxu1 }
 0x33b   :  { %v1041_v21 = vadd.f32 %v1037_v14, %v824_v43 }
 0x33d   :  { %v1234_v17 = vadd.f32 %v1230_v8, %v1041_v21 }
 0x33f   :  { %v1241_v22 = vadd.f32 %v1239_v20, %v1234_v17 }
 0x340   :  { %v761_v23 = vpop.f32.mrf.mxu2 }
 0x341   :  { %v1242_v26 = vpack.c.bf16 %v1241_v22, %v1241_v22 }
 0x342   :  { %v1232_v12 = vpop.f32.mrf.mxu1 }
 0x343   :  { %1243 = vst [vmem:[#allocation7] sm:$0xf] %v1242_v26 }
 0x344   :  { %1254 = dma.vmem_to_hbm [thread:$0]  %s1250_s10, 64, %s1252_s13, [#allocation6]  }
 0x345   :  { %1566 = dma.done.wait [#allocation6], 64  }
 0x346   :  { %1567 = vsyncadd [#allocation6], 4294967232 }
 0x347   :  { %1259 = vsyncpa [#allocation5], 1 }
 0x348   :  { %1260 = vsyncpa [#allocation6], 1 }

</bundles_post_ra>
